<compile_context>
chip_gen: v6e
topology: v6e:2x2x1
jax: 0.10.0
libtpu: 0.0.40
codegen_flags: <defaults>
</compile_context>

<pallas_src>
import jax
import jax.numpy as jnp
import numpy as np
from jax.experimental import pallas as pl
from jax.experimental.pallas import tpu as pltpu

BN_EPS = 1e-5
_HIGHEST = jax.lax.Precision.HIGHEST


def _round_up(x, m):
    return ((x + m - 1) // m) * m


# ----------------------------- Pallas kernel ------------------------------ #
def decoder_kernel(h1_ref, w1_ref, b1_ref, w2_ref, b2_ref, w3_ref, b3_ref,
                   out_ref):
    """One batch tile: fc1 -> tanh -> fc2' -> tanh -> fc3' -> sigmoid.

    BatchNorm layers (eval mode) are folded into (w2, b2) / (w3, b3) by the
    wrapper and Dropout is the identity, so the body is three matmuls, two
    tanh and one sigmoid.  Logits are emitted lane-dense ([1, block_n]).
    """
    x = h1_ref[...]                                            # [tn, C_in]

    # fc1 + tanh
    h = jnp.tanh(
        jnp.dot(x, w1_ref[...],
                preferred_element_type=jnp.float32,
                precision=_HIGHEST) + b1_ref[...])             # [tn, H1]

    # fc2 (BatchNorm1 folded in) + tanh
    h = jnp.tanh(
        jnp.dot(h, w2_ref[...],
                preferred_element_type=jnp.float32,
                precision=_HIGHEST) + b2_ref[...])             # [tn, H2]

    # fc3 (BatchNorm2 folded in) + sigmoid, computed as
    #   logit[0, n] = sum_k w3[0, k] * h[n, k]
    # so the result is already lane-dense and stores as a full-width vst.
    logit = jax.lax.dot_general(
        w3_ref[...], h,
        dimension_numbers=(((1,), (1,)), ((), ())),
        preferred_element_type=jnp.float32,
        precision=_HIGHEST) + b3_ref[...]                      # [1, tn]
    out_ref[...] = jax.nn.sigmoid(logit)
    # (Dropout layers are identity in eval mode.)


# ------------------------- BatchNorm folding (host) ------------------------ #
def _fold_batchnorms(params):
    """Fold eval-mode BatchNorm1d layers into the following Linear layers.

    (tanh(xW1+b1)*scale1 + shift1) @ W2 + b2
        == tanh(xW1+b1) @ (diag(scale1) W2) + (shift1 @ W2 + b2)
    and the same for BN2 -> fc3.
    """
    scale1 = params["g1"] / jnp.sqrt(params["v1"] + BN_EPS)    # [1, H1]
    shift1 = params["beta1"] - params["m1"] * scale1           # [1, H1]
    scale2 = params["g2"] / jnp.sqrt(params["v2"] + BN_EPS)    # [1, H2]
    shift2 = params["beta2"] - params["m2"] * scale2           # [1, H2]

    w2f = params["w2"] * scale1.T                              # [H1, H2]
    b2f = jnp.dot(shift1, params["w2"], precision=_HIGHEST) + params["b2"]
    w3f = params["w3"] * scale2.T                              # [H2, 1]
    b3f = jnp.dot(shift2, params["w3"], precision=_HIGHEST) + params["b3"]
    return w2f, b2f, w3f.T, b3f                                # w3 as [1, H2]


# ------------------------------- wrapper ----------------------------------- #
def decoder_forward(params, graph_embed, druga_id, drugb_id, cellline_id,
                    *, block_n=512):
    # gather + concat (glue, plain JAX / XLA)
    # TODO(synk): fuse the gather into the kernel (resident graph_embed +
    # scalar-prefetched ids) to avoid the h1 HBM round-trip for very large N.
    h1 = jnp.concatenate(
        [graph_embed[druga_id, :],
         graph_embed[drugb_id, :],
         graph_embed[cellline_id, :]], axis=1).astype(jnp.float32)

    N, C_in = h1.shape
    H1 = params["w1"].shape[1]
    H2 = params["w2"].shape[1]

    w2f, b2f, w3r, b3f = _fold_batchnorms(params)

    # --- tile-size selection -------------------------------------------------
    # Large batch tiles amortize the ~0.35us per-grid-step overhead and fill
    # the MXU M dimension.  Resident weights (~24 KB) + a double-buffered
    # [block_n, C_in] f32 tile (2*512*96*4 B ~ 0.4 MB) are far below every
    # generation's VMEM, so no vmem_limit_bytes override is needed.
    N128 = _round_up(max(N, 1), 128)
    if N128 <= 128:
        block_n = 128
    elif N128 <= 2 * block_n:
        # Medium batch: split into two parallel grid steps so both
        # TensorCores on v7x get work (harmless on v5e/v6e).
        block_n = _round_up((N128 + 1) // 2, 128)
    # else: large batch, keep the requested block_n (default 512).

    N_pad = _round_up(N, block_n)
    grid = (N_pad // block_n,)
    if N_pad != N:
        h1 = jnp.pad(h1, ((0, N_pad - N), (0, 0)))

    def resident(shape):
        # whole-array block; constant index_map => stays resident in VMEM
        return pl.BlockSpec(shape, lambda i: (0, 0))

    in_specs = [
        pl.BlockSpec((block_n, C_in), lambda i: (i, 0)),   # h1, tiled over batch
        resident((C_in, H1)), resident((1, H1)),           # fc1
        resident((H1, H2)), resident((1, H2)),             # fc2 (BN1 folded)
        resident((1, H2)), resident((1, 1)),               # fc3 row (BN2 folded)
    ]
    out_spec = pl.BlockSpec((1, block_n), lambda i: (0, i))   # lane-dense logits

    out = pl.pallas_call(
        decoder_kernel,
        out_shape=jax.ShapeDtypeStruct((1, N_pad), jnp.float32),
        grid=grid,
        in_specs=in_specs,
        out_specs=out_spec,
        compiler_params=pltpu.CompilerParams(
            dimension_semantics=("parallel",)),
    )(h1, params["w1"], params["b1"], w2f, b2f, w3r, b3f)

    return out[0, :N]                                      # .squeeze(dim=1)


# --------------------------- deterministic init ----------------------------- #
def xavier_uniform_t(key, out_f, in_f):
    """PyTorch xavier_uniform_ on a [out, in] Linear weight, returned as [in, out]."""
    bound = float(np.sqrt(6.0 / (in_f + out_f)))
    w = jax.random.uniform(key, (out_f, in_f), jnp.float32, -bound, bound)
    return w.T


def init_params(key, in_channels):
    H1, H2 = in_channels // 2, in_channels // 4
    k = jax.random.split(key, 11)
    params = {
        "w1": xavier_uniform_t(k[0], H1, in_channels),
        "b1": jnp.zeros((1, H1), jnp.float32),
        "g1": jax.random.uniform(k[1], (1, H1), jnp.float32, 0.5, 1.5),
        "beta1": 0.1 * jax.random.normal(k[2], (1, H1), jnp.float32),
        "m1": 0.1 * jax.random.normal(k[3], (1, H1), jnp.float32),
        "v1": jax.random.uniform(k[4], (1, H1), jnp.float32, 0.5, 1.5),
        "w2": xavier_uniform_t(k[5], H2, H1),
        "b2": jnp.zeros((1, H2), jnp.float32),
        "g2": jax.random.uniform(k[6], (1, H2), jnp.float32, 0.5, 1.5),
        "beta2": 0.1 * jax.random.normal(k[7], (1, H2), jnp.float32),
        "m2": 0.1 * jax.random.normal(k[8], (1, H2), jnp.float32),
        "v2": jax.random.uniform(k[9], (1, H2), jnp.float32, 0.5, 1.5),
        "w3": xavier_uniform_t(k[10], 1, H2),
        "b3": jnp.zeros((1, 1), jnp.float32),
    }
    return params


# ----------------------------- pure-JAX reference --------------------------- #
def decoder_reference(params, graph_embed, druga_id, drugb_id, cellline_id):
    """Unfolded (module-faithful) eval-mode reference."""
    h1 = jnp.concatenate(
        [graph_embed[druga_id, :],
         graph_embed[drugb_id, :],
         graph_embed[cellline_id, :]], axis=1)
    h = jnp.tanh(jnp.dot(h1, params["w1"], precision=_HIGHEST) + params["b1"])
    h = (h - params["m1"]) / jnp.sqrt(params["v1"] + BN_EPS) \
        * params["g1"] + params["beta1"]
    h = jnp.tanh(jnp.dot(h, params["w2"], precision=_HIGHEST) + params["b2"])
    h = (h - params["m2"]) / jnp.sqrt(params["v2"] + BN_EPS) \
        * params["g2"] + params["beta2"]
    logit = jnp.dot(h, params["w3"], precision=_HIGHEST) + params["b3"]
    return jax.nn.sigmoid(logit)[:, 0]


# ---------------------------------- main ------------------------------------ #
if __name__ == "__main__":
    key = jax.random.PRNGKey(0)

    D = 32                       # per-entity embedding dim
    in_channels = 3 * D          # fc1 input = concat of 3 embeddings
    num_nodes = 20
    N = 16                       # number of (drugA, drugB, cellline) triples

    k_embed, k_a, k_b, k_c, k_params = jax.random.split(key, 5)
    graph_embed = jax.random.normal(k_embed, (num_nodes, D), jnp.float32)
    druga_id = jax.random.randint(k_a, (N,), 0, num_nodes)
    drugb_id = jax.random.randint(k_b, (N,), 0, num_nodes)
    cellline_id = jax.random.randint(k_c, (N,), 0, num_nodes)

    params = init_params(k_params, in_channels)

    out = jax.block_until_ready(
        decoder_forward(params, graph_embed, druga_id, drugb_id, cellline_id))
    ref = jax.block_until_ready(
        decoder_reference(params, graph_embed, druga_id, drugb_id, cellline_id))

    assert out.shape == (N,)
    # Tolerance slightly loosened vs 1e-5: BN folding re-associates the f32
    # math (exact algebra, fp-rounding-only differences).
    np.testing.assert_allclose(np.asarray(out), np.asarray(ref),
                               rtol=1e-4, atol=1e-4)
    print("KERNEL_OK")
</pallas_src>

<mosaic_0001>
module attributes {stable_mosaic.version = 11 : i64} {
  func.func @decoder_kernel(%arg0: i32, %arg1: memref<128x96xf32, #tpu.memory_space<vmem>>, %arg2: memref<96x48xf32, #tpu.memory_space<vmem>>, %arg3: memref<1x48xf32, #tpu.memory_space<vmem>>, %arg4: memref<48x24xf32, #tpu.memory_space<vmem>>, %arg5: memref<1x24xf32, #tpu.memory_space<vmem>>, %arg6: memref<1x24xf32, #tpu.memory_space<vmem>>, %arg7: memref<1x1xf32, #tpu.memory_space<vmem>>, %arg8: memref<1x128xf32, #tpu.memory_space<vmem>>) attributes {dimension_semantics = [#tpu.dimension_semantics<parallel>], iteration_bounds = array<i64: 1>, scalar_prefetch = 0 : i64, scratch_operands = 0 : i64, tpu.core_type = #tpu.core_type<tc>, window_params = [{transform_indices = @transform_0, window_bounds = array<i64: 128, 96>}, {pipeline_mode = #tpu.pipeline_mode<synchronous>, transform_indices = @transform_1, window_bounds = array<i64: 96, 48>}, {pipeline_mode = #tpu.pipeline_mode<synchronous>, transform_indices = @transform_2, window_bounds = array<i64: 1, 48>}, {pipeline_mode = #tpu.pipeline_mode<synchronous>, transform_indices = @transform_3, window_bounds = array<i64: 48, 24>}, {pipeline_mode = #tpu.pipeline_mode<synchronous>, transform_indices = @transform_4, window_bounds = array<i64: 1, 24>}, {pipeline_mode = #tpu.pipeline_mode<synchronous>, transform_indices = @transform_5, window_bounds = array<i64: 1, 24>}, {pipeline_mode = #tpu.pipeline_mode<synchronous>, transform_indices = @transform_6, window_bounds = array<i64: 1, 1>}, {transform_indices = @transform_7, window_bounds = array<i64: 1, 128>}]} {
    %c0 = arith.constant 0 : index
    %c0_0 = arith.constant 0 : index
    %0 = vector.load %arg1[%c0, %c0_0] : memref<128x96xf32, #tpu.memory_space<vmem>>, vector<128x96xf32>
    %c0_1 = arith.constant 0 : index
    %c0_2 = arith.constant 0 : index
    %1 = vector.load %arg2[%c0_1, %c0_2] : memref<96x48xf32, #tpu.memory_space<vmem>>, vector<96x48xf32>
    %cst = arith.constant dense<0.000000e+00> : vector<128x48xf32>
    %2 = tpu.matmul %0, %1, %cst {dimension_numbers = #tpu.dot_dimension_numbers<[1], [0], [0], [1], [0, 0, 1, 1], [], []>, precision = #tpu.contract_precision<fp32>} : vector<128x96xf32>, vector<96x48xf32>, vector<128x48xf32> -> vector<128x48xf32>
    %c0_3 = arith.constant 0 : index
    %c0_4 = arith.constant 0 : index
    %3 = vector.load %arg3[%c0_3, %c0_4] : memref<1x48xf32, #tpu.memory_space<vmem>>, vector<1x48xf32>
    %4 = vector.broadcast %3 : vector<1x48xf32> to vector<128x48xf32>
    %5 = arith.addf %2, %4 : vector<128x48xf32>
    %6 = math.tanh %5 : vector<128x48xf32>
    %c0_5 = arith.constant 0 : index
    %c0_6 = arith.constant 0 : index
    %7 = vector.load %arg4[%c0_5, %c0_6] : memref<48x24xf32, #tpu.memory_space<vmem>>, vector<48x24xf32>
    %cst_7 = arith.constant dense<0.000000e+00> : vector<128x24xf32>
    %8 = tpu.matmul %6, %7, %cst_7 {dimension_numbers = #tpu.dot_dimension_numbers<[1], [0], [0], [1], [0, 0, 1, 1], [], []>, precision = #tpu.contract_precision<fp32>} : vector<128x48xf32>, vector<48x24xf32>, vector<128x24xf32> -> vector<128x24xf32>
    %c0_8 = arith.constant 0 : index
    %c0_9 = arith.constant 0 : index
    %9 = vector.load %arg5[%c0_8, %c0_9] : memref<1x24xf32, #tpu.memory_space<vmem>>, vector<1x24xf32>
    %10 = vector.broadcast %9 : vector<1x24xf32> to vector<128x24xf32>
    %11 = arith.addf %8, %10 : vector<128x24xf32>
    %12 = math.tanh %11 : vector<128x24xf32>
    %c0_10 = arith.constant 0 : index
    %c0_11 = arith.constant 0 : index
    %13 = vector.load %arg6[%c0_10, %c0_11] : memref<1x24xf32, #tpu.memory_space<vmem>>, vector<1x24xf32>
    %cst_12 = arith.constant dense<0.000000e+00> : vector<1x128xf32>
    %14 = tpu.matmul %13, %12, %cst_12 {dimension_numbers = #tpu.dot_dimension_numbers<[1], [1], [0], [0], [0, 0, 1, 0], [], []>, precision = #tpu.contract_precision<fp32>} : vector<1x24xf32>, vector<128x24xf32>, vector<1x128xf32> -> vector<1x128xf32>
    %c0_13 = arith.constant 0 : index
    %c0_14 = arith.constant 0 : index
    %15 = vector.load %arg7[%c0_13, %c0_14] : memref<1x1xf32, #tpu.memory_space<vmem>>, vector<1x1xf32>
    %16 = vector.broadcast %15 : vector<1x1xf32> to vector<1x128xf32>
    %17 = arith.addf %14, %16 : vector<1x128xf32>
    %18 = arith.negf %17 : vector<1x128xf32>
    %19 = math.exp %18 : vector<1x128xf32>
    %cst_15 = arith.constant 1.000000e+00 : f32
    %20 = vector.broadcast %cst_15 : f32 to vector<1x128xf32>
    %21 = arith.addf %20, %19 : vector<1x128xf32>
    %22 = arith.divf %20, %21 : vector<1x128xf32>
    %c0_16 = arith.constant 0 : index
    %c0_17 = arith.constant 0 : index
    %23 = vector.load %arg8[%c0_16, %c0_17] : memref<1x128xf32, #tpu.memory_space<vmem>>, vector<1x128xf32>
    tpu.vector_store %arg8[%c0_16, %c0_17], %22 {strides = array<i32>} : memref<1x128xf32, #tpu.memory_space<vmem>>, vector<1x128xf32>,
    return
  }
  func.func @transform_0(%arg0: i32) -> (i32, i32) {
    %c0_i32 = arith.constant 0 : i32
    %c0_i32_0 = arith.constant 0 : i32
    return %arg0, %c0_i32 : i32, i32
  }
  func.func @transform_1(%arg0: i32) -> (i32, i32) {
    %c0_i32 = arith.constant 0 : i32
    %c0_i32_0 = arith.constant 0 : i32
    %c0_i32_1 = arith.constant 0 : i32
    return %c0_i32, %c0_i32_0 : i32, i32
  }
  func.func @transform_2(%arg0: i32) -> (i32, i32) {
    %c0_i32 = arith.constant 0 : i32
    %c0_i32_0 = arith.constant 0 : i32
    %c0_i32_1 = arith.constant 0 : i32
    return %c0_i32, %c0_i32_0 : i32, i32
  }
  func.func @transform_3(%arg0: i32) -> (i32, i32) {
    %c0_i32 = arith.constant 0 : i32
    %c0_i32_0 = arith.constant 0 : i32
    %c0_i32_1 = arith.constant 0 : i32
    return %c0_i32, %c0_i32_0 : i32, i32
  }
  func.func @transform_4(%arg0: i32) -> (i32, i32) {
    %c0_i32 = arith.constant 0 : i32
    %c0_i32_0 = arith.constant 0 : i32
    %c0_i32_1 = arith.constant 0 : i32
    return %c0_i32, %c0_i32_0 : i32, i32
  }
  func.func @transform_5(%arg0: i32) -> (i32, i32) {
    %c0_i32 = arith.constant 0 : i32
    %c0_i32_0 = arith.constant 0 : i32
    %c0_i32_1 = arith.constant 0 : i32
    return %c0_i32, %c0_i32_0 : i32, i32
  }
  func.func @transform_6(%arg0: i32) -> (i32, i32) {
    %c0_i32 = arith.constant 0 : i32
    %c0_i32_0 = arith.constant 0 : i32
    %c0_i32_1 = arith.constant 0 : i32
    return %c0_i32, %c0_i32_0 : i32, i32
  }
  func.func @transform_7(%arg0: i32) -> (i32, i32) {
    %c0_i32 = arith.constant 0 : i32
    %c0_i32_0 = arith.constant 0 : i32
    return %c0_i32, %arg0 : i32, i32
  }
}

</mosaic_0001>

<bundles_post_ra>
// kernel: tpu_custom_call.1
= control target key start
LH: loop header
LB: loop body
LE: loop exit
PB: predicated region body
PF: predicated region fallthrough
CT: control target
= control target key end

     0   :  { %s6233_s0 = inlined_call_operand.vmem [shape: f32[128,96], index: 0, kind: input, shape index: {}]   ;;  %s6234_s1 = inlined_call_operand.vmem [shape: f32[96,48], index: 1, kind: input, shape index: {}]   ;;  %s6235_s2 = inlined_call_operand.vmem [shape: f32[1,48], index: 2, kind: input, shape index: {}]   ;;  %s6236_s3 = inlined_call_operand.vmem [shape: f32[48,24], index: 3, kind: input, shape index: {}]   ;;  %s6237_s4 = inlined_call_operand.vmem [shape: f32[1,24], index: 4, kind: input, shape index: {}]   ;;  %s6238_s5 = inlined_call_operand.vmem [shape: f32[1,24], index: 5, kind: input, shape index: {}]   ;;  %s6239_s6 = inlined_call_operand.<no memory space> [shape: f32[1,1], index: 6, kind: input, shape index: {}]   ;;  %s6240_s7 = inlined_call_operand.hbm [shape: f32[1,128], index: 7, kind: output, shape index: {}]  }
   0x1   :  { %v12_v0 = vstv %s6239_s6 }
   0x2   :  { %13 = vst [vmem:[#allocation2] sm:$0x1] %v12_v0 }
   0x3   :  { %v56_v1 = vld [vmem:[%s6234_s1 + $0x58] sm:$0xff]  ;;  %v55_v2 = vld [vmem:[%s6234_s1 + $0x50] sm:$0xff]  ;;  %v54_v3 = vld [vmem:[%s6234_s1 + $0x48] sm:$0xff]  ;;  %vm64_vm0 = vcmask 785408  }
   0x4   :  { %v4592_v4 = vand.u32 4294901760, %v56_v1  ;;  %v4594_v5 = vand.u32 4294901760, %v55_v2  ;;  %v4596_v6 = vand.u32 4294901760, %v54_v3  ;;  %v53_v7 = vld [vmem:[%s6234_s1 + $0x40] sm:$0xff]  ;;  %v52_v8 = vld [vmem:[%s6234_s1 + $0x38] sm:$0xff]  ;;  %v51_v9 = vld [vmem:[%s6234_s1 + $0x30] sm:$0xff] }
   0x5   :  { %v4607_v10 = vand.u32 4294901760, %v53_v7  ;;  %v4609_v11 = vand.u32 4294901760, %v52_v8  ;;  %v4611_v12 = vand.u32 4294901760, %v51_v9  ;;  %v50_v13 = vld [vmem:[%s6234_s1 + $0x28] sm:$0xff]  ;;  %v49_v14 = vld [vmem:[%s6234_s1 + $0x20] sm:$0xff]  ;;  %v48_v15 = vld [vmem:[%s6234_s1 + $0x18] sm:$0xff] }
   0x6   :  { %3727 = vmatprep.subr.mxu0 %v4592_v4  ;;  %v4624_v16 = vsub.f32 %v56_v1, %v4592_v4  ;;  %v4627_v17 = vsub.f32 %v55_v2, %v4594_v5  ;;  %v4629_v18 = vand.u32 4294901760, %v50_v13  ;;  %v4632_v19 = vsub.f32 %v54_v3, %v4596_v6  ;;  %v47_v20 = vld [vmem:[%s6234_s1 + $0x10] sm:$0xff]  ;;  %v46_v28 = vld [vmem:[%s6234_s1 + $0x8] sm:$0xff]  ;;  %v4676_v33 = vld [vmem:[%s6234_s1] sm:$0xff] }
   0x7   :  { %3728 = vmatpush3.msra.mxu0 %v4592_v4  ;;  %v4638_v21 = vand.u32 4294901760, %v49_v14  ;;  %v4641_v22 = vsub.f32 %v53_v7, %v4607_v10  ;;  %v4644_v23 = vsub.f32 %v52_v8, %v4609_v11  ;;  %v4656_v27 = vand.u32 4294901760, %v48_v15  ;;  %v29_v42 = vld [vmem:[%s6233_s0] sm:$0xff]  ;;  %v30_v43 = vld [vmem:[%s6233_s0 + $0x8] sm:$0xff]  ;;  %v31_v52 = vld [vmem:[%s6233_s0 + $0x10] sm:$0xff] }
   0x8   :  { %3729 = vmatprep.subr.mxu0 %v4594_v5  ;;  %v4648_v24 = vand.u32 4294901760, %v4624_v16  ;;  %v4651_v25 = vand.u32 4294901760, %v4627_v17  ;;  %v4654_v26 = vand.u32 4294901760, %v4632_v19  ;;  %v4668_v31 = vand.u32 4294901760, %v47_v20 }
   0x9   :  { %3730 = vmatpush3.msra.mxu0 %v4594_v5  ;;  %v4663_v29 = vand.u32 4294901760, %v4641_v22  ;;  %v4666_v30 = vand.u32 4294901760, %v4644_v23  ;;  %v4671_v32 = vsub.f32 %v51_v9, %v4611_v12  ;;  %v4686_v37 = vsub.f32 %v50_v13, %v4629_v18 }
   0xa   :  { %6305 = vst [vmem:[#allocation6_spill] sm:$0xff] %v4654_v26  ;;  %3731 = vmatprep.subr.mxu0 %v4596_v6  ;;  %v362_v34 = vsub.f32 %v4624_v16, %v4648_v24  ;;  %v369_v35 = vsub.f32 %v4627_v17, %v4651_v25  ;;  %v376_v36 = vsub.f32 %v4632_v19, %v4654_v26  ;;  %v4696_v41 = vand.u32 4294901760, %v46_v28 }
   0xb   :  { %6306 = vst [vmem:[#allocation7_spill] sm:$0xff] %v4663_v29  ;;  %6307 = vst [vmem:[#allocation8_spill] sm:$0xff] %v4666_v30  ;;  %3732 = vmatpush3.msra.mxu0 %v4596_v6  ;;  %v383_v38 = vsub.f32 %v4641_v22, %v4663_v29  ;;  %v390_v39 = vsub.f32 %v4644_v23, %v4666_v30  ;;  %v4694_v40 = vand.u32 4294901760, %v4671_v32  ;;  %v4706_v46 = vand.u32 4294901760, %v4686_v37 }
   0xc   :  { %3733 = vmatprep.subr.mxu0 %v4607_v10  ;;  %v363_v44 = vand.u32 4294901760, %v362_v34  ;;  %v370_v45 = vand.u32 4294901760, %v369_v35  ;;  %v4709_v47 = vand.u32 4294901760, %v4676_v33  ;;  %v377_v48 = vand.u32 4294901760, %v376_v36 }
   0xd   :  { %6308 = vst [vmem:[#allocation9_spill] sm:$0xff] %v4694_v40  ;;  %6309 = vst [vmem:[#allocation10_spill] sm:$0xff] %v4706_v46  ;;  %3734 = vmatpush3.msra.mxu0 %v4607_v10  ;;  %v384_v49 = vand.u32 4294901760, %v383_v38  ;;  %v397_v50 = vsub.f32 %v4671_v32, %v4694_v40  ;;  %v4715_v51 = vsub.f32 %v49_v14, %v4638_v21 }
   0xe   :  { %14 = vsyncpa [#allocation4], 0  ;;  %3735 = vmatprep.subr.mxu0 %v4609_v11  ;;  %3775 = vmatprep.subr.mxu1 %v363_v44  ;;  %v391_v53 = vand.u32 4294901760, %v390_v39  ;;  %v66_v54 = vsel %vm64_vm0, %v29_v42, 0  ;;  %v69_v55 = vsel %vm64_vm0, %v30_v43, 0  ;;  %v4724_v56 = vsub.f32 %v48_v15, %v4656_v27  ;;  %v32_v61 = vld [vmem:[%s6233_s0 + $0x18] sm:$0xff] }
   0xf   :  { %3736 = vmatpush3.msra.mxu0 %v4609_v11  ;;  %3776 = vmatpush3.msra.mxu1 %v363_v44  ;;  %v404_v57 = vsub.f32 %v4686_v37, %v4706_v46  ;;  %v4730_v58 = vand.u32 4294901760, %v4715_v51  ;;  %v4732_v59 = vand.u32 4294901760, %v66_v54  ;;  %v4734_v60 = vand.u32 4294901760, %v69_v55  ;;  %v33_v38 = vld [vmem:[%s6233_s0 + $0x20] sm:$0xff] }
  0x10   :  { %3737 = vmatprep.subr.mxu0 %v4611_v12  ;;  %3777 = vmatprep.subr.mxu1 %v370_v45  ;;  %v398_v62 = vand.u32 4294901760, %v397_v50  ;;  %v4741_v63 = vand.u32 4294901760, %v4724_v56  ;;  %v4744_v0 = vsub.f32 %v47_v20, %v4668_v31  ;;  %v72_v1 = vsel %vm64_vm0, %v31_v52, 0  ;;  %v34_v52 = vld [vmem:[%s6233_s0 + $0x28] sm:$0xff] }
  0x11   :  { %6310 = vst [vmem:[#allocation11_spill] sm:$0xff] %v4730_v58  ;;  %6311 = vst [vmem:[#allocation12_spill] sm:$0xff] %v4732_v59  ;;  %3738 = vmatpush3.msra.mxu0 %v4611_v12  ;;  %3778 = vmatpush3.msra.mxu1 %v370_v45  ;;  %v411_v2 = vsub.f32 %v4715_v51, %v4730_v58  ;;  %v4751_v3 = vsub.f32 %v66_v54, %v4732_v59  ;;  %v4756_v8 = vand.u32 4294901760, %v72_v1  ;;  %vm1376_vm1 = vcmask 392192  }
  0x12   :  { %6312 = vst [vmem:[#allocation13_spill] sm:$0xff] %v4741_v63  ;;  %v4754_v7 = vsub.f32 %v69_v55, %v4734_v60  ;;  %3739 = vmatprep.subr.mxu0 %v4629_v18  ;;  %3779 = vmatprep.subr.mxu1 %v377_v48  ;;  %v418_v9 = vsub.f32 %v4724_v56, %v4741_v63  ;;  %v4762_v13 = vand.u32 4294901760, %v4744_v0  ;;  %v75_v14 = vsel %vm64_vm0, %v32_v61, 0 }
  0x13   :  { %v4766_v15 = vsub.f32 %v46_v28, %v4696_v41  ;;  %3740 = vmatpush3.msra.mxu0 %v4629_v18  ;;  %3780 = vmatpush3.msra.mxu1 %v377_v48  ;;  %v405_v20 = vand.u32 4294901760, %v404_v57  ;;  %v6243_v34 = vand.u32 4294901760, %v4751_v3  ;;  %v4772_v36 = vsub.f32 %v72_v1, %v4756_v8 }
  0x14   :  { %6313 = vst [vmem:[#allocation14_spill] sm:$0xff] %v4762_v13  ;;  %v6242_v35 = vand.u32 4294901760, %v4754_v7  ;;  %3741 = vmatprep.subr.mxu0 %v4638_v21  ;;  %3781 = vmatprep.subr.mxu1 %v384_v49  ;;  %v4778_v28 = vand.u32 4294901760, %v411_v2  ;;  %v425_v39 = vsub.f32 %v4744_v0, %v4762_v13  ;;  %v4782_v42 = vand.u32 4294901760, %v75_v14 }
  0x15   :  { %v4785_v43 = vand.u32 4294901760, %v4766_v15  ;;  %3742 = vmatpush3.msra.mxu0 %v4638_v21  ;;  %3782 = vmatpush3.msra.mxu1 %v384_v49  ;;  %v193_v44 = vsub.f32 %v4751_v3, %v6243_v34  ;;  %v6241_v48 = vand.u32 4294901760, %v4772_v36  ;;  %v4797_v50 = vsub.f32 %v4676_v33, %v4709_v47  ;;  %v35_v33 = vld [vmem:[%s6233_s0 + $0x30] sm:$0xff] }
  0x16   :  { %v203_v45 = vsub.f32 %v4754_v7, %v6242_v35  ;;  %3743 = vmatprep.subr.mxu0 %v4656_v27  ;;  %3783 = vmatprep.subr.mxu1 %v391_v53  ;;  %v4803_v49 = vand.u32 4294901760, %v418_v9  ;;  %v4806_v54 = vsub.f32 %v75_v14, %v4782_v42  ;;  %v78_v57 = vsel %vm64_vm0, %v33_v38, 0  ;;  %v36_v14 = vld [vmem:[%s6233_s0 + $0x38] sm:$0xff] }
  0x17   :  { %6314 = vst [vmem:[#allocation15_spill] sm:$0xff] %v4785_v43  ;;  %v432_v55 = vsub.f32 %v4766_v15, %v4785_v43  ;;  %3744 = vmatpush3.msra.mxu0 %v4656_v27  ;;  %3784 = vmatpush3.msra.mxu1 %v391_v53  ;;  %v194_v61 = vand.u32 4294901760, %v193_v44  ;;  %v4815_v1 = vand.u32 4294901760, %v425_v39  ;;  %v213_v2 = vsub.f32 %v4772_v36, %v6241_v48  ;;  %v37_v48 = vld [vmem:[%s6233_s0 + $0x40] sm:$0xff] }
  0x18   :  { %v4821_v9 = vand.u32 4294901760, %v4797_v50  ;;  %3745 = vmatprep.subr.mxu0 %v4668_v31  ;;  %3785 = vmatprep.subr.mxu1 %v398_v62  ;;  %v204_v38 = vand.u32 4294901760, %v203_v45  ;;  %v6250_v53 = vand.u32 4294901760, %v4806_v54  ;;  %v4828_v44 = vand.u32 4294901760, %v78_v57 }
  0x19   :  { %v81_v39 = vsel %vm64_vm0, %v34_v52, 0  ;;  %3746 = vmatpush3.msra.mxu0 %v4668_v31  ;;  %3786 = vmatpush3.msra.mxu1 %v398_v62  ;;  %v214_v35 = vand.u32 4294901760, %v213_v2  ;;  %v433_v34 = vand.u32 4294901760, %v432_v55  ;;  %v84_v13 = vsel %vm64_vm0, %v35_v33, 0  ;;  %v38_v55 = vld [vmem:[%s6233_s0 + $0x48] sm:$0xff]  ;;  %v39_v33 = vld [vmem:[%s6233_s0 + $0x50] sm:$0xff] }
  0x1a   :  { %6315 = vst [vmem:[#allocation16_spill] sm:$0xff] %v4821_v9  ;;  %v4835_v43 = vand.u32 4294901760, %v81_v39  ;;  %3747 = vmatprep.subr.mxu0 %v4696_v41  ;;  %3787 = vmatprep.subr.mxu1 %v405_v20  ;;  %v223_v45 = vsub.f32 %v4806_v54, %v6250_v53  ;;  %v4843_v52 = vsub.f32 %v78_v57, %v4828_v44  ;;  %v4845_v63 = vand.u32 4294901760, %v84_v13 }
  0x1b   :  { %v87_v62 = vsel %vm64_vm0, %v36_v14, 0  ;;  %3748 = vmatpush3.msra.mxu0 %v4696_v41  ;;  %3788 = vmatpush3.msra.mxu1 %v405_v20  ;;  %v439_v2 = vsub.f32 %v4797_v50, %v4821_v9  ;;  %v90_v14 = vsel %vm64_vm0, %v37_v48, 0  ;;  %v96_v46 = vsel %vm64_vm0, %v39_v33, 0 }
  0x1c   :  { %v4858_v57 = vsub.f32 %v81_v39, %v4835_v43  ;;  %v4860_v53 = vand.u32 4294901760, %v87_v62  ;;  %3749 = vmatprep.subr.mxu0 %v4709_v47  ;;  %3789 = vmatprep.subr.mxu1 %v4778_v28  ;;  %v224_v58 = vand.u32 4294901760, %v223_v45  ;;  %v4867_v40 = vsub.f32 %v84_v13, %v4845_v63  ;;  %v40_v39 = vld [vmem:[%s6233_s0 + $0x58] sm:$0xff] }
  0x1d   :  { %v4869_v20 = vand.u32 4294901760, %v90_v14  ;;  %3750 = vmatpush3.msra.mxu0 %v4709_v47  ;;  %3751 = vmatprep.mubr.f32.mxu0 %v194_v61  ;;  %v93_v45 = vsel %vm64_vm0, %v38_v55, 0  ;;  %v6316_v13 = vand.u32 4294901760, %v4843_v52  ;;  %v99_v33 = vsel %vm64_vm0, %v40_v39, 0 }
  0x1e   :  { %v4877_v9 = vsub.f32 %v87_v62, %v4860_v53  ;;  %3790 = vmatpush3.msra.mxu1 %v4778_v28  ;;  %3752 = vmatmul.mubr.f32.vlgmr.msra.gmra.mxu0 %v204_v38  ;;  %v6267_v29 = vand.u32 4294901760, %v4867_v40  ;;  %v4889_v48 = vand.u32 4294901760, %v93_v45  ;;  %v6317_v62 = vand.u32 4294901760, %v4858_v57 }
  0x1f   :  { %v233_v30 = vsub.f32 %v4843_v52, %v6316_v13  ;;  %v4887_v61 = vsub.f32 %v90_v14, %v4869_v20  ;;  %3791 = vmatprep.subr.mxu1 %v4803_v49  ;;  %3754 = vmatprep.mubr.f32.mxu0 %v214_v35  ;;  %v4896_v38 = vand.u32 4294901760, %v96_v46  ;;  %v41_v14 = vld [vmem:[%s6233_s0 + $0x60] sm:$0xff]  ;;  %v4912_v28 = vand.u32 4294901760, %v99_v33 }
  0x20   :  { %v243_v55 = vsub.f32 %v4858_v57, %v6317_v62  ;;  %3792 = vmatpush3.msra.mxu1 %v4803_v49  ;;  %3823 = vmatprep.subr.mxu0 %v4624_v16  ;;  %v4905_v35 = vsub.f32 %v93_v45, %v4889_v48  ;;  %v440_v62 = vand.u32 4294901760, %v439_v2  ;;  %v253_v39 = vsub.f32 %v4867_v40, %v6267_v29  ;;  %v42_v49 = vld [vmem:[%s6233_s0 + $0x68] sm:$0xff] }
  0x21   :  { %v234_v13 = vand.u32 4294901760, %v233_v30  ;;  %3793 = vmatprep.subr.mxu1 %v4815_v1  ;;  %3799 = vmatprep.mubr.f32.mxu1 %v4732_v59  ;;  %v6318_v45 = vand.u32 4294901760, %v4877_v9  ;;  %v6268_v59 = vand.u32 4294901760, %v4887_v61  ;;  %v102_v26 = vsel %vm64_vm0, %v41_v14, 0 }
  0x22   :  { %3794 = vmatpush3.msra.mxu1 %v4815_v1  ;;  %3755 = vmatmul.mubr.f32.gmra.mxu0 %v224_v58  ;;  %v244_v30 = vand.u32 4294901760, %v243_v55  ;;  %v4924_v29 = vsub.f32 %v96_v46, %v4896_v38  ;;  %v6269_v1 = vand.u32 4294901760, %v4905_v35  ;;  %v105_v58 = vsel %vm64_vm0, %v42_v49, 0  ;;  %v43_v55 = vld [vmem:[%s6233_s0 + $0x70] sm:$0xff]  ;;  %v44_v49 = vld [vmem:[%s6233_s0 + $0x78] sm:$0xff] }
  0x23   :  { %v263_v2 = vsub.f32 %v4877_v9, %v6318_v45  ;;  %3795 = vmatprep.subr.mxu1 %v433_v34  ;;  %3757 = vmatprep.mubr.f32.mxu0 %v234_v13  ;;  %v254_v14 = vand.u32 4294901760, %v253_v39  ;;  %v4934_v13 = vsub.f32 %v99_v33, %v4912_v28  ;;  %v4936_v46 = vand.u32 4294901760, %v102_v26 }
  0x24   :  { %3796 = vmatpush3.msra.mxu1 %v433_v34  ;;  %3824 = vmatpush3.msra.mxu0 %v4624_v16  ;;  %v273_v34 = vsub.f32 %v4887_v61, %v6268_v59  ;;  %v4947_v39 = vand.u32 4294901760, %v105_v58  ;;  %v111_v59 = vsel %vm64_vm0, %v44_v49, 0  ;;  %vm4537_vm2 = vmmov 0  }
  0x25   :  { %3797 = vmatprep.subr.mxu1 %v440_v62  ;;  %3825 = vmatprep.subr.mxu0 %v4627_v17  ;;  %v264_v16 = vand.u32 4294901760, %v263_v2  ;;  %v302_v45 = vand.u32 4294901760, %v4934_v13  ;;  %v4958_v2 = vsub.f32 %v102_v26, %v4936_v46  ;;  %vm2608_vm3 = vcmask 195584  }
  0x26   :  { %3798 = vmatpush3.msra.mxu1 %v440_v62  ;;  %3758 = vmatmul.mubr.f32.gmra.mxu0 %v244_v30  ;;  %v108_v62 = vsel %vm64_vm0, %v43_v55, 0  ;;  %v283_v30 = vsub.f32 %v4905_v35, %v6269_v1  ;;  %v274_v55 = vand.u32 4294901760, %v273_v34  ;;  %v4970_v1 = vsub.f32 %v105_v58, %v4947_v39 }
  0x27   :  { %3800 = vmatmul.mubr.f32.vlgmr.msra.gmra.mxu1 %v4734_v60  ;;  %3871 = vmatprep.subr.mxu1 %v4592_v4  ;;  %v4962_v33 = vand.u32 4294901760, %v108_v62  ;;  %v303_v34 = vsub.f32 %v4934_v13, %v302_v45  ;;  %v312_v49 = vand.u32 4294901760, %v4958_v2 }
  0x28   :  { %3872 = vmatpush3.msra.mxu1 %v4592_v4  ;;  %3826 = vmatpush3.msra.mxu0 %v4627_v17  ;;  %v6319_v17 = vand.u32 4294901760, %v4924_v29  ;;  %v284_v26 = vand.u32 4294901760, %v283_v30  ;;  %v322_v30 = vand.u32 4294901760, %v4970_v1 }
  0x29   :  { %3760 = vmatprep.mubr.f32.mxu0 %v254_v14  ;;  %3802 = vmatprep.mubr.f32.mxu1 %v4756_v8  ;;  %v4984_v58 = vsub.f32 %v108_v62, %v4962_v33 }
  0x2a   :  { %3873 = vmatprep.subr.mxu1 %v4594_v5  ;;  %3761 = vmatmul.mubr.f32.gmra.mxu0 %v264_v16  ;;  %v293_v14 = vsub.f32 %v4924_v29, %v6319_v17  ;;  %v4974_v16 = vand.u32 4294901760, %v111_v59 }
  0x2b   :  { %3803 = vmatmul.mubr.f32.gmra.mxu1 %v4782_v42  ;;  %3827 = vmatprep.subr.mxu0 %v4632_v19  ;;  %v332_v62 = vand.u32 4294901760, %v4984_v58 }
  0x2c   :  { %3874 = vmatpush3.msra.mxu1 %v4594_v5  ;;  %3828 = vmatpush3.msra.mxu0 %v4632_v19  ;;  %v294_v19 = vand.u32 4294901760, %v293_v14  ;;  %v4991_v17 = vsub.f32 %v111_v59, %v4974_v16  ;;  %v323_v59 = vsub.f32 %v4970_v1, %v322_v30 }
  0x2d   :  { %3829 = vmatprep.subr.mxu0 %v4641_v22  ;;  %3875 = vmatprep.subr.mxu1 %v4596_v6 }
  0x2e   :  { %3763 = vmatprep.mubr.f32.mxu0 %v274_v55  ;;  %3805 = vmatprep.mubr.f32.mxu1 %v4828_v44  ;;  %v304_v55 = vand.u32 4294901760, %v303_v34  ;;  %v342_v14 = vand.u32 4294901760, %v4991_v17  ;;  %v324_v34 = vand.u32 4294901760, %v323_v59 }
  0x2f   :  { %3830 = vmatpush3.msra.mxu0 %v4641_v22  ;;  %3876 = vmatpush3.msra.mxu1 %v4596_v6  ;;  %v313_v22 = vsub.f32 %v4958_v2, %v312_v49 }
  0x30   :  { %3764 = vmatmul.mubr.f32.gmra.mxu0 %v284_v26  ;;  %3806 = vmatmul.mubr.f32.gmra.mxu1 %v4835_v43  ;;  %v333_v26 = vsub.f32 %v4984_v58, %v332_v62 }
  0x31   :  { %3831 = vmatprep.subr.mxu0 %v4644_v23  ;;  %3877 = vmatprep.subr.mxu1 %v4607_v10 }
  0x32   :  { %3832 = vmatpush3.msra.mxu0 %v4644_v23  ;;  %3878 = vmatpush3.msra.mxu1 %v4607_v10  ;;  %v314_v23 = vand.u32 4294901760, %v313_v22 }
  0x33   :  { %3833 = vmatprep.subr.mxu0 %v4671_v32  ;;  %3766 = vmatprep.mubr.f32.mxu0 %v294_v19  ;;  %v334_v19 = vand.u32 4294901760, %v333_v26 }
  0x34   :  { %3808 = vmatprep.mubr.f32.mxu1 %v4845_v63  ;;  %3834 = vmatpush3.msra.mxu0 %v4671_v32  ;;  %v343_v32 = vsub.f32 %v4991_v17, %v342_v14 }
  0x35   :  { %3879 = vmatprep.subr.mxu1 %v4609_v11  ;;  %3767 = vmatmul.mubr.f32.gmra.mxu0 %v304_v55 }
  0x36   :  { %3809 = vmatmul.mubr.f32.gmra.mxu1 %v4860_v53  ;;  %3835 = vmatprep.subr.mxu0 %v4686_v37 }
  0x37   :  { %3880 = vmatpush3.msra.mxu1 %v4609_v11  ;;  %3836 = vmatpush3.msra.mxu0 %v4686_v37  ;;  %v344_v37 = vand.u32 4294901760, %v343_v32 }
  0x38   :  { %3837 = vmatprep.subr.mxu0 %v4715_v51  ;;  %3881 = vmatprep.subr.mxu1 %v4611_v12 }
  0x39   :  { %3769 = vmatprep.mubr.f32.mxu0 %v314_v23  ;;  %3811 = vmatprep.mubr.f32.mxu1 %v4869_v20 }
  0x3a   :  { %3838 = vmatpush3.msra.mxu0 %v4715_v51  ;;  %3882 = vmatpush3.msra.mxu1 %v4611_v12  ;;  %v6320_v51 = vand.u32 4294901760, %v4751_v3 }
  0x3b   :  { %3770 = vmatmul.mubr.f32.gmra.mxu0 %v324_v34  ;;  %3812 = vmatmul.mubr.f32.gmra.mxu1 %v4889_v48 }
  0x3c   :  { %3839 = vmatprep.subr.mxu0 %v4724_v56  ;;  %3883 = vmatprep.subr.mxu1 %v4629_v18 }
  0x3d   :  { %3840 = vmatpush3.msra.mxu0 %v4724_v56  ;;  %3884 = vmatpush3.msra.mxu1 %v4629_v18  ;;  %v6321_v56 = vand.u32 4294901760, %v4754_v7 }
  0x3e   :  { %3841 = vmatprep.subr.mxu0 %v4744_v0  ;;  %3772 = vmatprep.mubr.f32.mxu0 %v334_v19 }
  0x3f   :  { %3814 = vmatprep.mubr.f32.mxu1 %v4896_v38  ;;  %3842 = vmatpush3.msra.mxu0 %v4744_v0  ;;  %v6322_v0 = vand.u32 4294901760, %v4772_v36 }
  0x40   :  { %3885 = vmatprep.subr.mxu1 %v4638_v21  ;;  %3773 = vmatmul.mubr.f32.gmra.mxu0 %v344_v37 }
  0x41   :  { %3815 = vmatmul.mubr.f32.gmra.mxu1 %v4912_v28  ;;  %3843 = vmatprep.subr.mxu0 %v4766_v15 }
  0x42   :  { %3886 = vmatpush3.msra.mxu1 %v4638_v21  ;;  %3844 = vmatpush3.msra.mxu0 %v4766_v15  ;;  %v6329_v15 = vld [vmem:[#allocation9_spill] sm:$0xff] }
  0x43   :  { %3845 = vmatprep.subr.mxu0 %v4797_v50  ;;  %3887 = vmatprep.subr.mxu1 %v4656_v27 }
  0x44   :  { %3817 = vmatprep.mubr.f32.mxu1 %v4936_v46  ;;  %3846 = vmatpush3.msra.mxu0 %v4797_v50  ;;  %v6332_v50 = vld [vmem:[#allocation10_spill] sm:$0xff] }
  0x45   :  { %3847 = vmatprep.mubr.f32.mxu0 %v4751_v3  ;;  %3888 = vmatpush3.msra.mxu1 %v4656_v27  ;;  %v6324_v3 = vld [vmem:[#allocation6_spill] sm:$0xff] }
  0x46   :  { %3818 = vmatmul.mubr.f32.gmra.mxu1 %v4947_v39  ;;  %3848 = vmatmul.mubr.f32.vlgmr.msra.gmra.mxu0 %v4754_v7  ;;  %v6327_v7 = vand.u32 4294901760, %v4858_v57 }
  0x47   :  { %3889 = vmatprep.subr.mxu1 %v4668_v31  ;;  %3820 = vmatprep.mubr.f32.mxu1 %v4962_v33 }
  0x48   :  { %3890 = vmatpush3.msra.mxu1 %v4668_v31  ;;  %3850 = vmatprep.mubr.f32.mxu0 %v4772_v36  ;;  %v6330_v36 = vand.u32 4294901760, %v4867_v40 }
  0x49   :  { %3891 = vmatprep.subr.mxu1 %v4696_v41  ;;  %3919 = vmatprep.subr.mxu0 %v4648_v24 }
  0x4a   :  { %3821 = vmatmul.mubr.f32.gmra.mxu1 %v4974_v16  ;;  %3851 = vmatmul.mubr.f32.gmra.mxu0 %v4806_v54 }
  0x4b   :  { %3892 = vmatpush3.msra.mxu1 %v4696_v41  ;;  %3853 = vmatprep.mubr.f32.mxu0 %v4843_v52 }
  0x4c   :  { %3893 = vmatprep.subr.mxu1 %v4709_v47  ;;  %3895 = vmatprep.mubr.f32.mxu1 %v6320_v51 }
  0x4d   :  { %3894 = vmatpush3.msra.mxu1 %v4709_v47  ;;  %3920 = vmatpush3.msra.mxu0 %v4648_v24  ;;  %v6323_v24 = vand.u32 4294901760, %v4806_v54  ;;  %v6335_v54 = vand.u32 4294901760, %v4905_v35 }
  0x4e   :  { %3854 = vmatmul.mubr.f32.gmra.mxu0 %v4858_v57  ;;  %3896 = vmatmul.mubr.f32.vlgmr.msra.gmra.mxu1 %v6321_v56 }
  0x4f   :  { %3967 = vmatprep.subr.mxu1 %v4592_v4  ;;  %3921 = vmatprep.subr.mxu0 %v4651_v25 }
  0x50   :  { %3968 = vmatpush3.msra.mxu1 %v4592_v4  ;;  %3922 = vmatpush3.msra.mxu0 %v4651_v25  ;;  %v6325_v4 = vld [vmem:[#allocation7_spill] sm:$0xff]  ;;  %v6326_v25 = vand.u32 4294901760, %v4843_v52  ;;  %v6338_v52 = vand.u32 4294901760, %v4924_v29 }
  0x51   :  { %3856 = vmatprep.mubr.f32.mxu0 %v4867_v40  ;;  %3898 = vmatprep.mubr.f32.mxu1 %v6322_v0  ;;  %v6334_v40 = vand.u32 4294901760, %v4887_v61 }
  0x52   :  { %3969 = vmatprep.subr.mxu1 %v4594_v5  ;;  %3857 = vmatmul.mubr.f32.gmra.mxu0 %v4877_v9 }
  0x53   :  { %3899 = vmatmul.mubr.f32.gmra.mxu1 %v6323_v24  ;;  %3923 = vmatprep.subr.mxu0 %v6324_v3 }
  0x54   :  { %3970 = vmatpush3.msra.mxu1 %v4594_v5  ;;  %3924 = vmatpush3.msra.mxu0 %v6324_v3  ;;  %v6328_v5 = vld [vmem:[#allocation8_spill] sm:$0xff] }
  0x55   :  { %3925 = vmatprep.subr.mxu0 %v6325_v4  ;;  %3971 = vmatprep.subr.mxu1 %v4596_v6 }
  0x56   :  { %3859 = vmatprep.mubr.f32.mxu0 %v4887_v61  ;;  %3901 = vmatprep.mubr.f32.mxu1 %v6326_v25 }
  0x57   :  { %3926 = vmatpush3.msra.mxu0 %v6325_v4  ;;  %3972 = vmatpush3.msra.mxu1 %v4596_v6  ;;  %v6331_v6 = vand.u32 4294901760, %v4877_v9  ;;  %v6337_v9 = vld [vmem:[#allocation14_spill] sm:$0xff] }
  0x58   :  { %3860 = vmatmul.mubr.f32.gmra.mxu0 %v4905_v35  ;;  %3902 = vmatmul.mubr.f32.gmra.mxu1 %v6327_v7 }
  0x59   :  { %3927 = vmatprep.subr.mxu0 %v6328_v5  ;;  %3973 = vmatprep.subr.mxu1 %v4607_v10 }
  0x5a   :  { %3928 = vmatpush3.msra.mxu0 %v6328_v5  ;;  %3974 = vmatpush3.msra.mxu1 %v4607_v10  ;;  %v6333_v10 = vld [vmem:[#allocation11_spill] sm:$0xff] }
  0x5b   :  { %3929 = vmatprep.subr.mxu0 %v6329_v15  ;;  %3862 = vmatprep.mubr.f32.mxu0 %v4924_v29  ;;  %v6341_v29 = vld [vmem:[#allocation12_spill] sm:$0xff] }
  0x5c   :  { %3904 = vmatprep.mubr.f32.mxu1 %v6330_v36  ;;  %3930 = vmatpush3.msra.mxu0 %v6329_v15 }
  0x5d   :  { %3975 = vmatprep.subr.mxu1 %v4609_v11  ;;  %3863 = vmatmul.mubr.f32.gmra.mxu0 %v4934_v13  ;;  %v1363_v13 = vld [vmem:[%s6236_s3] sm:$0xff] }
  0x5e   :  { %3905 = vmatmul.mubr.f32.gmra.mxu1 %v6331_v6  ;;  %3931 = vmatprep.subr.mxu0 %v6332_v50 }
  0x5f   :  { %3976 = vmatpush3.msra.mxu1 %v4609_v11  ;;  %3932 = vmatpush3.msra.mxu0 %v6332_v50  ;;  %v6336_v11 = vld [vmem:[#allocation13_spill] sm:$0xff] }
  0x60   :  { %3933 = vmatprep.subr.mxu0 %v6333_v10  ;;  %3977 = vmatprep.subr.mxu1 %v4611_v12 }
  0x61   :  { %3865 = vmatprep.mubr.f32.mxu0 %v4958_v2  ;;  %3907 = vmatprep.mubr.f32.mxu1 %v6334_v40 }
  0x62   :  { %3934 = vmatpush3.msra.mxu0 %v6333_v10  ;;  %3978 = vmatpush3.msra.mxu1 %v4611_v12  ;;  %v6339_v12 = vld [vmem:[#allocation15_spill] sm:$0xff] }
  0x63   :  { %3866 = vmatmul.mubr.f32.gmra.mxu0 %v4970_v1  ;;  %3908 = vmatmul.mubr.f32.gmra.mxu1 %v6335_v54 }
  0x64   :  { %3935 = vmatprep.subr.mxu0 %v6336_v11  ;;  %3979 = vmatprep.subr.mxu1 %v4629_v18 }
  0x65   :  { %3936 = vmatpush3.msra.mxu0 %v6336_v11  ;;  %3980 = vmatpush3.msra.mxu1 %v4629_v18  ;;  %v6340_v18 = vld [vmem:[#allocation16_spill] sm:$0xff] }
  0x66   :  { %3937 = vmatprep.subr.mxu0 %v6337_v9  ;;  %3868 = vmatprep.mubr.f32.mxu0 %v4984_v58 }
  0x67   :  { %3910 = vmatprep.mubr.f32.mxu1 %v6338_v52  ;;  %3938 = vmatpush3.msra.mxu0 %v6337_v9 }
  0x68   :  { %3981 = vmatprep.subr.mxu1 %v4638_v21  ;;  %3869 = vmatmul.mubr.f32.gmra.mxu0 %v4991_v17 }
  0x69   :  { %3911 = vmatmul.mubr.f32.gmra.mxu1 %v302_v45  ;;  %3939 = vmatprep.subr.mxu0 %v6339_v12  ;;  %v5245_v45 = vand.u32 4294901760, %v1363_v13 }
  0x6a   :  { %3982 = vmatpush3.msra.mxu1 %v4638_v21  ;;  %3940 = vmatpush3.msra.mxu0 %v6339_v12  ;;  %v1368_v21 = vld [vmem:[%s6236_s3 + $0x28] sm:$0xff] }
  0x6b   :  { %3941 = vmatprep.subr.mxu0 %v6340_v18  ;;  %3983 = vmatprep.subr.mxu1 %v4656_v27  ;;  %6355 = vst [vmem:[#allocation19_spill] sm:$0xff] %v5245_v45  ;;  %v5254_v58 = vsub.f32 %v1363_v13, %v5245_v45 }
  0x6c   :  { %3913 = vmatprep.mubr.f32.mxu1 %v312_v49  ;;  %3942 = vmatpush3.msra.mxu0 %v6340_v18 }
  0x6d   :  { %3943 = vmatprep.mubr.f32.mxu0 %v6341_v29  ;;  %3984 = vmatpush3.msra.mxu1 %v4656_v27  ;;  %v5182_v27 = vand.u32 4294901760, %v1368_v21  ;;  %6357 = vst [vmem:[#allocation21_spill] sm:$0xff] %v5254_v58  ;;  %v5262_v55 = vand.u32 4294901760, %v5254_v58 }
  0x6e   :  { %3914 = vmatmul.mubr.f32.gmra.mxu1 %v322_v30  ;;  %3944 = vmatmul.mubr.f32.vlgmr.msra.gmra.mxu0 %v4734_v60 }
  0x6f   :  { %3985 = vmatprep.subr.mxu1 %v4668_v31  ;;  %3916 = vmatprep.mubr.f32.mxu1 %v332_v62  ;;  %6342 = vst [vmem:[#allocation6_spill] sm:$0xff] %v5182_v27  ;;  %6359 = vst [vmem:[#allocation23_spill] sm:$0xff] %v5262_v55  ;;  %v1715_v62 = vsub.f32 %v5254_v58, %v5262_v55 }
  0x70   :  { %3986 = vmatpush3.msra.mxu1 %v4668_v31  ;;  %3946 = vmatprep.mubr.f32.mxu0 %v4756_v8  ;;  %v1367_v31 = vld [vmem:[%s6236_s3 + $0x20] sm:$0xff] }
  0x71   :  { %3987 = vmatprep.subr.mxu1 %v4696_v41  ;;  %4015 = vmatprep.subr.mxu0 %v5182_v27 }
  0x72   :  { %3917 = vmatmul.mubr.f32.gmra.mxu1 %v342_v14  ;;  %3947 = vmatmul.mubr.f32.gmra.mxu0 %v4782_v42  ;;  %v1716_v14 = vand.u32 4294901760, %v1715_v62 }
  0x73   :  { %3988 = vmatpush3.msra.mxu1 %v4696_v41  ;;  %3949 = vmatprep.mubr.f32.mxu0 %v4828_v44  ;;  %v5190_v41 = vsub.f32 %v1368_v21, %v5182_v27 }
  0x74   :  { %3989 = vmatprep.subr.mxu1 %v4709_v47  ;;  %3991 = vmatprep.mubr.f32.mxu1 %v6341_v29 }
  0x75   :  { %3990 = vmatpush3.msra.mxu1 %v4709_v47  ;;  %4016 = vmatpush3.msra.mxu0 %v5182_v27  ;;  %6343 = vst [vmem:[#allocation7_spill] sm:$0xff] %v5190_v41  ;;  %v5192_v47 = vand.u32 4294901760, %v1367_v31 }
  0x76   :  { %3950 = vmatmul.mubr.f32.gmra.mxu0 %v4835_v43  ;;  %3992 = vmatmul.mubr.f32.vlgmr.msra.gmra.mxu1 %v4734_v60  ;;  %v1366_v60 = vld [vmem:[%s6236_s3 + $0x18] sm:$0xff] }
  0x77   :  { %3952 = vmatprep.mubr.f32.mxu0 %v4845_v63  ;;  %3994 = vmatprep.mubr.f32.mxu1 %v4756_v8  ;;  %6344 = vst [vmem:[#allocation8_spill] sm:$0xff] %v5192_v47  ;;  %v5202_v8 = vsub.f32 %v1367_v31, %v5192_v47 }
  0x78   :  { %4017 = vmatprep.subr.mxu0 %v5192_v47 }
  0x79   :  { %6346 = vst [vmem:[#allocation10_spill] sm:$0xff] %v5202_v8  ;;  %4018 = vmatpush3.msra.mxu0 %v5192_v47 }
  0x7a   :  { %3953 = vmatmul.mubr.f32.gmra.mxu0 %v4860_v53  ;;  %3995 = vmatmul.mubr.f32.gmra.mxu1 %v4782_v42  ;;  %v5204_v42 = vand.u32 4294901760, %v1366_v60 }
  0x7b   :  { %3955 = vmatprep.mubr.f32.mxu0 %v4869_v20  ;;  %3997 = vmatprep.mubr.f32.mxu1 %v4828_v44  ;;  %v5213_v44 = vand.u32 4294901760, %v5202_v8 }
  0x7c   :  { %6347 = vst [vmem:[#allocation11_spill] sm:$0xff] %v5204_v42  ;;  %4019 = vmatprep.subr.mxu0 %v5204_v42  ;;  %v5217_v57 = vsub.f32 %v1366_v60, %v5204_v42 }
  0x7d   :  { %6348 = vst [vmem:[#allocation13_spill] sm:$0xff] %v5213_v44  ;;  %4020 = vmatpush3.msra.mxu0 %v5204_v42 }
  0x7e   :  { %3956 = vmatmul.mubr.f32.gmra.mxu0 %v4889_v48  ;;  %3998 = vmatmul.mubr.f32.gmra.mxu1 %v4835_v43  ;;  %v1365_v43 = vld [vmem:[%s6236_s3 + $0x10] sm:$0xff]  ;;  %6349 = vst [vmem:[#allocation14_spill] sm:$0xff] %v5217_v57 }
  0x7f   :  { %3958 = vmatprep.mubr.f32.mxu0 %v4896_v38  ;;  %4000 = vmatprep.mubr.f32.mxu1 %v4845_v63  ;;  %v5198_v63 = vand.u32 4294901760, %v5190_v41 }
  0x81   :  { %6345 = vst [vmem:[#allocation9_spill] sm:$0xff] %v5198_v63 }
  0x82   :  { %3959 = vmatmul.mubr.f32.gmra.mxu0 %v4912_v28  ;;  %4001 = vmatmul.mubr.f32.gmra.mxu1 %v4860_v53  ;;  %v1680_v53 = vsub.f32 %v5190_v41, %v5198_v63 }
  0x83   :  { %3961 = vmatprep.mubr.f32.mxu0 %v4936_v46  ;;  %4003 = vmatprep.mubr.f32.mxu1 %v4869_v20  ;;  %v5219_v20 = vand.u32 4294901760, %v1365_v43 }
  0x84   :  { %v1681_v61 = vand.u32 4294901760, %v1680_v53 }
  0x85   :  { %6350 = vst [vmem:[#allocation15_spill] sm:$0xff] %v5219_v20  ;;  %4021 = vmatprep.subr.mxu0 %v5219_v20  ;;  %v5232_v35 = vsub.f32 %v1365_v43, %v5219_v20 }
  0x86   :  { %3962 = vmatmul.mubr.f32.gmra.mxu0 %v4947_v39  ;;  %4004 = vmatmul.mubr.f32.gmra.mxu1 %v4889_v48  ;;  %v1364_v48 = vld [vmem:[%s6236_s3 + $0x8] sm:$0xff] }
  0x87   :  { %3964 = vmatprep.mubr.f32.mxu0 %v4962_v33  ;;  %4006 = vmatprep.mubr.f32.mxu1 %v4896_v38  ;;  %v5228_v38 = vand.u32 4294901760, %v5217_v57  ;;  %6352 = vst [vmem:[#allocation12_spill] sm:$0xff] %v5232_v35  ;;  %v5235_v1 = vand.u32 4294901760, %v1364_v48 }
  0x88   :  { %4022 = vmatpush3.msra.mxu0 %v5219_v20  ;;  %4051 = vmatprep.subr.mxu1 %v1681_v61 }
  0x89   :  { %6351 = vst [vmem:[#allocation16_spill] sm:$0xff] %v5228_v38  ;;  %6353 = vst [vmem:[#allocation17_spill] sm:$0xff] %v5235_v1  ;;  %4052 = vmatpush3.msra.mxu1 %v1681_v61  ;;  %v5248_v2 = vsub.f32 %v1364_v48, %v5235_v1  ;;  %4023 = vmatprep.subr.mxu0 %v5235_v1 }
  0x8a   :  { %3965 = vmatmul.mubr.f32.gmra.mxu0 %v4974_v16  ;;  %4007 = vmatmul.mubr.f32.gmra.mxu1 %v4912_v28  ;;  %v1687_v28 = vsub.f32 %v5202_v8, %v5213_v44 }
  0x8b   :  { %4009 = vmatprep.mubr.f32.mxu1 %v4936_v46  ;;  %6356 = vst [vmem:[#allocation20_spill] sm:$0xff] %v5248_v2  ;;  %4024 = vmatpush3.msra.mxu0 %v5235_v1  ;;  %v5258_v30 = vand.u32 4294901760, %v5248_v2 }
  0x8c   :  { %v1688_v46 = vand.u32 4294901760, %v1687_v28  ;;  %4025 = vmatprep.subr.mxu0 %v5245_v45 }
  0x8d   :  { %6358 = vst [vmem:[#allocation22_spill] sm:$0xff] %v5258_v30  ;;  %4026 = vmatpush3.msra.mxu0 %v5245_v45  ;;  %v1708_v22 = vsub.f32 %v5248_v2, %v5258_v30 }
  0x8e   :  { %4010 = vmatmul.mubr.f32.gmra.mxu1 %v4947_v39  ;;  %v5243_v39 = vand.u32 4294901760, %v5232_v35  ;;  %4053 = vmatprep.subr.mxu1 %v1688_v46 }
  0x8f   :  { %4012 = vmatprep.mubr.f32.mxu1 %v4962_v33  ;;  %v1694_v33 = vsub.f32 %v5217_v57, %v5228_v38  ;;  %4054 = vmatpush3.msra.mxu1 %v1688_v46  ;;  %v1709_v59 = vand.u32 4294901760, %v1708_v22  ;;  %v5362_v57 = vld [vmem:[%s6235_s2] ss:$0 sm:$0xff] }
  0x90   :  { %6354 = vst [vmem:[#allocation18_spill] sm:$0xff] %v5243_v39  ;;  %v1701_v49 = vsub.f32 %v5232_v35, %v5243_v39  ;;  %4087 = vmatprep.subr.mxu0 %v5190_v41 }
  0x92   :  { %4013 = vmatmul.mubr.f32.gmra.mxu1 %v4974_v16  ;;  %v1695_v16 = vand.u32 4294901760, %v1694_v33  ;;  %v1702_v17 = vand.u32 4294901760, %v1701_v49 }
  0x94   :  { %4055 = vmatprep.subr.mxu1 %v1695_v16 }
  0x95   :  { %4056 = vmatpush3.msra.mxu1 %v1695_v16 }
  0x96   :  { %4057 = vmatprep.subr.mxu1 %v1702_v17 }
  0x97   :  { %4058 = vmatpush3.msra.mxu1 %v1702_v17 }
  0x98   :  { %4059 = vmatprep.subr.mxu1 %v1709_v59 }
  0x99   :  { %4060 = vmatpush3.msra.mxu1 %v1709_v59 }
  0x9a   :  { %4061 = vmatprep.subr.mxu1 %v1716_v14 }
  0x9b   :  { %4062 = vmatpush3.msra.mxu1 %v1716_v14 }
  0x9c   :  { %4123 = vmatprep.subr.mxu1 %v5182_v27 }
  0xde   :  { %v3753_v23 = vpop.f32.mrf.mxu0 }
  0xdf   :  { %v207_v20 = vadd.f32 %v3753_v23, %v5362_v57 }
  0xe0   :  { %v5271_v26 = vpop.f32.mrf.mxu0 }
  0xe2   :  { %v5273_v34 = vpop.f32.mrf.mxu0 }
  0xe4   :  { %v5275_v32 = vpop.f32.mrf.mxu0 }
  0xe6   :  { %v5277_v19 = vpop.f32.mrf.mxu0 }
  0xe7   :  { %v3801_v37 = vpop.f32.mrf.mxu1  ;;  %v247_v23 = vadd.f32 %v5277_v19, %v5362_v57 }
  0xe8   :  { %v5279_v51 = vpop.f32.mrf.mxu0 }
  0xe9   :  { %v477_v56 = vpop.f32.mrf.mxu1 }
  0xea   :  { %v5281_v0 = vpop.f32.mrf.mxu0 }
  0xeb   :  { %v5283_v24 = vpop.f32.mrf.mxu1 }
  0xec   :  { %v5285_v3 = vpop.f32.mrf.mxu0 }
  0xed   :  { %v5287_v4 = vpop.f32.mrf.mxu1 }
  0xf0   :  { %v5289_v25 = vpop.f32.mrf.mxu0  ;;  %v5291_v7 = vpop.f32.mrf.mxu1 }
  0xf2   :  { %v5293_v5 = vpop.f32.mrf.mxu0  ;;  %v5295_v15 = vpop.f32.mrf.mxu1 }
  0xf5   :  { %v5297_v36 = vpop.f32.mrf.mxu0 }
  0xf6   :  { %v5299_v6 = vpop.f32.mrf.mxu1 }
  0xf7   :  { %v5301_v50 = vpop.f32.mrf.mxu0 }
  0xf8   :  { %v5303_v10 = vpop.f32.mrf.mxu1 }
  0xfb   :  { %v5305_v40 = vpop.f32.mrf.mxu0  ;;  %v5307_v54 = vpop.f32.mrf.mxu1 }
  0xfd   :  { %v5309_v11 = vpop.f32.mrf.mxu0  ;;  %v5311_v9 = vpop.f32.mrf.mxu1 }
 0x100   :  { %v5313_v52 = vpop.f32.mrf.mxu0 }
 0x101   :  { %v5315_v12 = vpop.f32.mrf.mxu1 }
 0x102   :  { %v5317_v18 = vpop.f32.mrf.mxu0 }
 0x103   :  { %v5319_v29 = vpop.f32.mrf.mxu1 }
 0x106   :  { %v5321_v21 = vpop.f32.mrf.mxu1  ;;  %v3849_v31 = vpop.f32.mrf.mxu0 }
 0x108   :  { %v5323_v60 = vpop.f32.mrf.mxu1  ;;  %v663_v43 = vpop.f32.mrf.mxu0 }
 0x10a   :  { %v5325_v53 = vpop.f32.mrf.mxu1  ;;  %v3852_v48 = vpop.f32.mrf.mxu0 }
 0x10c   :  { %v5327_v61 = vpop.f32.mrf.mxu1  ;;  %v677_v28 = vpop.f32.mrf.mxu0 }
 0x10e   :  { %v3855_v13 = vpop.f32.mrf.mxu0  ;;  %v3897_v46 = vpop.f32.mrf.mxu1 }
 0x110   :  { %v5329_v33 = vpop.f32.mrf.mxu0  ;;  %v853_v16 = vpop.f32.mrf.mxu1 }
 0x112   :  { %v5331_v49 = vpop.f32.mrf.mxu0 }
 0x113   :  { %v3900_v17 = vpop.f32.mrf.mxu1 }
 0x114   :  { %v5333_v22 = vpop.f32.mrf.mxu0 }
 0x115   :  { %v869_v62 = vpop.f32.mrf.mxu1 }
 0x118   :  { %v5335_v59 = vpop.f32.mrf.mxu0  ;;  %v5337_v14 = vpop.f32.mrf.mxu1 }
 0x11a   :  { %v5339_v55 = vpop.f32.mrf.mxu0  ;;  %v5341_v30 = vpop.f32.mrf.mxu1 }
 0x11b   :  { %6360 = vst [vmem:[#allocation24_spill] sm:$0xff] %v5339_v55 }
 0x11d   :  { %v5343_v39 = vpop.f32.mrf.mxu0 }
 0x11e   :  { %6361 = vst [vmem:[#allocation25_spill] sm:$0xff] %v5343_v39  ;;  %v5345_v38 = vpop.f32.mrf.mxu1 }
 0x11f   :  { %v5347_v44 = vpop.f32.mrf.mxu0 }
 0x120   :  { %6362 = vst [vmem:[#allocation26_spill] sm:$0xff] %v5347_v44  ;;  %v5349_v63 = vpop.f32.mrf.mxu1 }
 0x123   :  { %v5351_v58 = vpop.f32.mrf.mxu0  ;;  %v5353_v2 = vpop.f32.mrf.mxu1 }
 0x124   :  { %6363 = vst [vmem:[#allocation27_spill] sm:$0xff] %v5351_v58  ;;  %6364 = vst [vmem:[#allocation28_spill] sm:$0xff] %v5353_v2  ;;  %v484_v58 = vadd.f32 %v3801_v37, %v207_v20  ;;  %v237_v20 = vadd.f32 %v5362_v57, %v5279_v51 }
 0x125   :  { %v5355_v35 = vpop.f32.mrf.mxu0  ;;  %v5357_v45 = vpop.f32.mrf.mxu1 }
 0x126   :  { %6365 = vst [vmem:[#allocation29_spill] sm:$0xff] %v5355_v35  ;;  %6366 = vst [vmem:[#allocation30_spill] sm:$0xff] %v5357_v45  ;;  %v197_v45 = vadd.f32 %v5362_v57, %v5271_v26  ;;  %v227_v35 = vadd.f32 %v5273_v34, %v5362_v57  ;;  %v671_v39 = vadd.f32 %v3849_v31, %v484_v58 }
 0x127   :  { %v267_v31 = vadd.f32 %v5281_v0, %v5362_v57 }
 0x128   :  { %v5364_v1 = vpop.f32.mrf.mxu0  ;;  %v496_v26 = vadd.f32 %v5283_v24, %v227_v35  ;;  %v862_v55 = vadd.f32 %v3897_v46, %v671_v39  ;;  %v508_v35 = vadd.f32 %v5291_v7, %v247_v23 }
 0x129   :  { %6367 = vst [vmem:[#allocation31_spill] sm:$0xff] %v5364_v1  ;;  %v5366_v8 = vpop.f32.mrf.mxu1 }
 0x12a   :  { %6368 = vst [vmem:[#allocation32_spill] sm:$0xff] %v5366_v8  ;;  %v5368_v41 = vpop.f32.mrf.mxu0  ;;  %v478_v8 = vadd.f32 %v477_v56, %v197_v45  ;;  %v685_v37 = vadd.f32 %v3852_v48, %v496_v26  ;;  %v699_v0 = vadd.f32 %v3855_v13, %v508_v35 }
 0x12b   :  { %6369 = vst [vmem:[#allocation33_spill] sm:$0xff] %v5368_v41  ;;  %v5371_v42 = vpop.f32.mrf.mxu1 }
 0x12c   :  { %6370 = vst [vmem:[#allocation34_spill] sm:$0xff] %v5371_v42  ;;  %v664_v2 = vadd.f32 %v663_v43, %v478_v8  ;;  %v287_v8 = vadd.f32 %v5289_v25, %v5362_v57  ;;  %v878_v43 = vadd.f32 %v3900_v17, %v685_v37 }
 0x12e   :  { %v5373_v47 = vpop.f32.mrf.mxu1  ;;  %v3945_v27 = vpop.f32.mrf.mxu0  ;;  %v854_v19 = vadd.f32 %v853_v16, %v664_v2  ;;  %v502_v2 = vadd.f32 %v5295_v15, %v237_v20 }
 0x12f   :  { %6371 = vst [vmem:[#allocation35_spill] sm:$0xff] %v5373_v47  ;;  %v217_v47 = vadd.f32 %v5362_v57, %v5275_v32  ;;  %v1087_v56 = vadd.f32 %v3945_v27, %v862_v55  ;;  %v257_v32 = vadd.f32 %v5362_v57, %v5285_v3  ;;  %v277_v27 = vadd.f32 %v5362_v57, %v5293_v5 }
 0x130   :  { %v5379_v44 = vpop.f32.mrf.mxu1  ;;  %v1080_v1 = vpop.f32.mrf.mxu0  ;;  %v307_v55 = vadd.f32 %v5297_v36, %v5362_v57  ;;  %v692_v5 = vadd.f32 %v5329_v33, %v502_v2  ;;  %v894_v36 = vadd.f32 %v5337_v14, %v699_v0 }
 0x131   :  { %v490_v58 = vadd.f32 %v5287_v4, %v217_v47  ;;  %v1081_v46 = vadd.f32 %v1080_v1, %v854_v19  ;;  %v297_v1 = vadd.f32 %v5362_v57, %v5301_v50  ;;  %v514_v16 = vadd.f32 %v5303_v10, %v257_v32 }
 0x132   :  { %v5383_v41 = vpop.f32.mrf.mxu1  ;;  %v3948_v42 = vpop.f32.mrf.mxu0  ;;  %v886_v33 = vadd.f32 %v5341_v30, %v692_v5  ;;  %v337_v30 = vadd.f32 %v5362_v57, %v5317_v18  ;;  %v6380_v5 = vld [vmem:[#allocation32_spill] sm:$0xff] }
 0x133   :  { %v678_v24 = vadd.f32 %v677_v28, %v490_v58  ;;  %v1099_v48 = vadd.f32 %v3948_v42, %v878_v43  ;;  %v520_v28 = vadd.f32 %v5299_v6, %v267_v31  ;;  %v327_v42 = vadd.f32 %v5305_v40, %v5362_v57 }
 0x134   :  { %v5390_v34 = vpop.f32.mrf.mxu1  ;;  %v1092_v45 = vpop.f32.mrf.mxu0  ;;  %v317_v6 = vadd.f32 %v5362_v57, %v5309_v11  ;;  %v347_v40 = vadd.f32 %v5313_v52, %v5362_v57  ;;  %v706_v58 = vadd.f32 %v5333_v22, %v514_v16  ;;  %v538_v31 = vadd.f32 %v5319_v29, %v297_v1  ;;  %v6372_v57 = vld [vmem:[#allocation24_spill] sm:$0xff]  ;;  %v6379_v1 = vld [vmem:[#allocation31_spill] sm:$0xff] }
 0x135   :  { %v870_v25 = vadd.f32 %v869_v62, %v678_v24  ;;  %v532_v62 = vadd.f32 %v5307_v54, %v287_v8  ;;  %v713_v50 = vadd.f32 %v5331_v49, %v520_v28  ;;  %v544_v54 = vadd.f32 %v5315_v12, %v307_v55  ;;  %v6376_v55 = vld [vmem:[#allocation27_spill] sm:$0xff] }
 0x136   :  { %v3951_v39 = vpop.f32.mrf.mxu0  ;;  %v3993_v51 = vpop.f32.mrf.mxu1  ;;  %v902_v22 = vadd.f32 %v5349_v63, %v706_v58 }
 0x137   :  { %v1260_v47 = vadd.f32 %v3993_v51, %v1087_v56  ;;  %v1093_v13 = vadd.f32 %v1092_v45, %v870_v25  ;;  %v1111_v20 = vadd.f32 %v3951_v39, %v894_v36  ;;  %v526_v45 = vadd.f32 %v5311_v9, %v277_v27  ;;  %v6375_v27 = vld [vmem:[#allocation26_spill] sm:$0xff] }
 0x138   :  { %v1104_v3 = vpop.f32.mrf.mxu0  ;;  %v1253_v4 = vpop.f32.mrf.mxu1  ;;  %v910_v49 = vadd.f32 %v5345_v38, %v713_v50  ;;  %v556_v9 = vadd.f32 %v5321_v21, %v327_v42  ;;  %v727_v52 = vadd.f32 %v5335_v59, %v532_v62  ;;  %v550_v38 = vadd.f32 %v5323_v60, %v317_v6  ;;  %v6373_v21 = vld [vmem:[#allocation28_spill] sm:$0xff]  ;;  %v6377_v60 = vld [vmem:[#allocation29_spill] sm:$0xff] }
 0x139   :  { %4446 = vtanh.f32 %v1260_v47  ;;  %v1254_v7 = vadd.f32 %v1253_v4, %v1081_v46  ;;  %v1105_v19 = vadd.f32 %v1104_v3, %v886_v33  ;;  %v568_v39 = vadd.f32 %v5325_v53, %v347_v40  ;;  %v6374_v47 = vld [vmem:[#allocation25_spill] sm:$0xff]  ;;  %v6383_v33 = vld [vmem:[#allocation35_spill] sm:$0xff] }
 0x13a   :  { %v3954_v15 = vpop.f32.mrf.mxu0  ;;  %v3996_v17 = vpop.f32.mrf.mxu1  ;;  %v562_v51 = vadd.f32 %v5327_v61, %v337_v30  ;;  %v720_v18 = vadd.f32 %v6372_v57, %v526_v45  ;;  %v926_v43 = vadd.f32 %v6373_v21, %v727_v52  ;;  %v741_v63 = vadd.f32 %v6374_v47, %v544_v54  ;;  %v6378_v61 = vld [vmem:[#allocation30_spill] sm:$0xff] }
 0x13b   :  { %4448 = vtanh.f32 %v1254_v7  ;;  %v1272_v23 = vadd.f32 %v3996_v17, %v1099_v48  ;;  %v1123_v8 = vadd.f32 %v3954_v15, %v910_v49  ;;  %v734_v2 = vadd.f32 %v6375_v27, %v538_v31  ;;  %v6381_v17 = vld [vmem:[#allocation33_spill] sm:$0xff]  ;;  %v6384_v47 = vld [vmem:[#allocation6_spill] sm:$0xff] }
 0x13c   :  { %v1116_v10 = vpop.f32.mrf.mxu0  ;;  %v1265_v26 = vpop.f32.mrf.mxu1  ;;  %v755_v0 = vadd.f32 %v6376_v55, %v556_v9  ;;  %v748_v3 = vadd.f32 %v6377_v60, %v550_v38  ;;  %v918_v25 = vadd.f32 %v6378_v61, %v720_v18  ;;  %v769_v16 = vadd.f32 %v6379_v1, %v568_v39  ;;  %v6386_v1 = vld [vmem:[#allocation11_spill] sm:$0xff] }
 0x13d   :  { %4450 = vtanh.f32 %v1272_v23  ;;  %v1266_v14 = vadd.f32 %v1265_v26, %v1093_v13  ;;  %v1117_v59 = vadd.f32 %v1116_v10, %v902_v22  ;;  %v942_v15 = vadd.f32 %v6380_v5, %v741_v63  ;;  %v6382_v13 = vld [vmem:[#allocation34_spill] sm:$0xff] }
 0x13e   :  { %v3957_v11 = vpop.f32.mrf.mxu0  ;;  %v3999_v37 = vpop.f32.mrf.mxu1  ;;  %v762_v36 = vadd.f32 %v6381_v17, %v562_v51  ;;  %v934_v23 = vadd.f32 %v6382_v13, %v734_v2  ;;  %v974_v45 = vadd.f32 %v5383_v41, %v769_v16 }
 0x13f   :  { %4452 = vtanh.f32 %v1266_v14  ;;  %v1284_v56 = vadd.f32 %v3999_v37, %v1111_v20  ;;  %v1135_v48 = vadd.f32 %v3957_v11, %v926_v43  ;;  %v958_v20 = vadd.f32 %v6383_v33, %v755_v0  ;;  %v6385_v0 = vld [vmem:[#allocation8_spill] sm:$0xff] }
 0x140   :  { %v1128_v32 = vpop.f32.mrf.mxu0  ;;  %v1277_v12 = vpop.f32.mrf.mxu1  ;;  %v950_v14 = vadd.f32 %v5379_v44, %v748_v3 }
 0x141   :  { %4454 = vtanh.f32 %v1284_v56  ;;  %v1278_v35 = vadd.f32 %v1277_v12, %v1105_v19  ;;  %v1129_v6 = vadd.f32 %v1128_v32, %v918_v25  ;;  %v966_v56 = vadd.f32 %v5390_v34, %v762_v36 }
 0x142   :  { %v3960_v29 = vpop.f32.mrf.mxu0  ;;  %v4002_v24 = vpop.f32.mrf.mxu1 }
 0x143   :  { %4456 = vtanh.f32 %v1278_v35  ;;  %v1296_v46 = vadd.f32 %v4002_v24, %v1123_v8  ;;  %v1147_v11 = vadd.f32 %v3960_v29, %v942_v15 }
 0x144   :  { %v1140_v53 = vpop.f32.mrf.mxu0  ;;  %v1289_v4 = vpop.f32.mrf.mxu1 }
 0x145   :  { %4458 = vtanh.f32 %v1296_v46  ;;  %v1290_v7 = vadd.f32 %v1289_v4, %v1117_v59  ;;  %v1141_v30 = vadd.f32 %v1140_v53, %v934_v23 }
 0x146   :  { %v4447_v28 = vpop.eup %4446  ;;  %v3963_v42 = vpop.f32.mrf.mxu0 }
 0x147   :  { %v4005_v62 = vpop.f32.mrf.mxu1  ;;  %4460 = vtanh.f32 %v1290_v7  ;;  %v1381_v10 = vsel %vm1376_vm1, %v4447_v28, 0  ;;  %v1159_v41 = vadd.f32 %v3963_v42, %v958_v20 }
 0x148   :  { %v1308_v50 = vadd.f32 %v4005_v62, %v1135_v48  ;;  %v4449_v26 = vpop.eup %4448  ;;  %v1152_v40 = vpop.f32.mrf.mxu0  ;;  %v5448_v58 = vand.u32 4294901760, %v1381_v10 }
 0x149   :  { %v1301_v54 = vpop.f32.mrf.mxu1  ;;  %v1378_v49 = vsel %vm1376_vm1, %v4449_v26, 0  ;;  %v1153_v8 = vadd.f32 %v1152_v40, %v950_v14 }
 0x14a   :  { %4462 = vtanh.f32 %v1308_v50  ;;  %v1302_v37 = vadd.f32 %v1301_v54, %v1129_v6  ;;  %v4451_v19 = vpop.eup %4450  ;;  %v3966_v31 = vpop.f32.mrf.mxu0  ;;  %v5452_v52 = vand.u32 4294901760, %v1378_v49  ;;  %v5455_v44 = vsub.f32 %v1381_v10, %v5448_v58  ;;  %v6387_v6 = vld [vmem:[#allocation15_spill] sm:$0xff] }
 0x14b   :  { %v4008_v9 = vpop.f32.mrf.mxu1  ;;  %v1387_v12 = vsel %vm1376_vm1, %v4451_v19, 0  ;;  %v1171_v57 = vadd.f32 %v3966_v31, %v974_v45 }
 0x14c   :  { %4464 = vtanh.f32 %v1302_v37  ;;  %v1320_v32 = vadd.f32 %v4008_v9, %v1147_v11  ;;  %v4453_v22 = vpop.eup %4452  ;;  %v1164_v35 = vpop.f32.mrf.mxu0  ;;  %4063 = vmatprep.mubr.f32.mxu1 %v5452_v52  ;;  %v5459_v34 = vand.u32 4294901760, %v1387_v12  ;;  %v5462_v39 = vsub.f32 %v1378_v49, %v5452_v52  ;;  %v6388_v11 = vld [vmem:[#allocation7_spill] sm:$0xff] }
 0x14d   :  { %v1313_v38 = vpop.f32.mrf.mxu1  ;;  %v1508_v51 = vand.u32 4294901760, %v5455_v44  ;;  %4064 = vmatmul.mubr.f32.vlgmr.msra.gmra.mxu1 %v5448_v58  ;;  %v1384_v29 = vsel %vm1376_vm1, %v4453_v22, 0  ;;  %v1165_v27 = vadd.f32 %v1164_v35, %v966_v56 }
 0x14e   :  { %4466 = vtanh.f32 %v1320_v32  ;;  %v1314_v18 = vadd.f32 %v1313_v38, %v1141_v30  ;;  %v4455_v24 = vpop.eup %4454  ;;  %v5467_v43 = vand.u32 4294901760, %v1384_v29  ;;  %v1498_v59 = vand.u32 4294901760, %v5462_v39  ;;  %4124 = vmatpush3.msra.mxu1 %v6384_v47  ;;  %v6389_v30 = vld [vmem:[#allocation10_spill] sm:$0xff]  ;;  %v6390_v32 = vld [vmem:[#allocation17_spill] sm:$0xff] }
 0x14f   :  { %v4011_v21 = vpop.f32.mrf.mxu1  ;;  %v1509_v46 = vsub.f32 %v5455_v44, %v1508_v51  ;;  %v5475_v63 = vsub.f32 %v1387_v12, %v5459_v34  ;;  %v1393_v55 = vsel %vm1376_vm1, %v4455_v24, 0  ;;  %4125 = vmatprep.subr.mxu1 %v6385_v0 }
 0x150   :  { %4468 = vtanh.f32 %v1314_v18  ;;  %v1332_v2 = vadd.f32 %v4011_v21, %v1159_v41  ;;  %v4457_v60 = vpop.eup %4456  ;;  %4066 = vmatprep.mubr.f32.mxu1 %v5467_v43  ;;  %v1499_v53 = vsub.f32 %v5462_v39, %v1498_v59  ;;  %v5483_v61 = vand.u32 4294901760, %v1393_v55  ;;  %4126 = vmatpush3.msra.mxu1 %v6385_v0 }
 0x151   :  { %v1325_v3 = vpop.f32.mrf.mxu1  ;;  %v1510_v4 = vand.u32 4294901760, %v1509_v46  ;;  %v5486_v25 = vsub.f32 %v1384_v29, %v5467_v43  ;;  %4067 = vmatmul.mubr.f32.gmra.mxu1 %v5459_v34  ;;  %v1390_v7 = vsel %vm1376_vm1, %v4457_v60, 0  ;;  %v1528_v28 = vand.u32 4294901760, %v5475_v63  ;;  %4127 = vmatprep.subr.mxu1 %v6386_v1 }
 0x152   :  { %4470 = vtanh.f32 %v1332_v2  ;;  %v1326_v48 = vadd.f32 %v1325_v3, %v1153_v8  ;;  %v4459_v16 = vpop.eup %4458  ;;  %v1500_v15 = vand.u32 4294901760, %v1499_v53  ;;  %v5493_v17 = vand.u32 4294901760, %v1390_v7  ;;  %4128 = vmatpush3.msra.mxu1 %v6386_v1  ;;  %v6391_v2 = vld [vmem:[#allocation14_spill] sm:$0xff]  ;;  %v6392_v3 = vld [vmem:[#allocation19_spill] sm:$0xff] }
 0x153   :  { %v4014_v5 = vpop.f32.mrf.mxu1  ;;  %v1518_v36 = vand.u32 4294901760, %v5486_v25  ;;  %v5497_v13 = vsub.f32 %v1393_v55, %v5483_v61  ;;  %v1529_v42 = vsub.f32 %v5475_v63, %v1528_v28  ;;  %v1399_v62 = vsel %vm1376_vm1, %v4459_v16, 0  ;;  %4129 = vmatprep.subr.mxu1 %v6387_v6 }
 0x154   :  { %4472 = vtanh.f32 %v1326_v48  ;;  %v1344_v23 = vadd.f32 %v4014_v5, %v1171_v57  ;;  %v4461_v50 = vpop.eup %4460  ;;  %4027 = vmatprep.mubr.f32.mxu0 %v1500_v15  ;;  %4069 = vmatprep.mubr.f32.mxu1 %v5493_v17  ;;  %v5509_v33 = vand.u32 4294901760, %v1399_v62  ;;  %v5512_v20 = vsub.f32 %v1390_v7, %v5493_v17 }
 0x155   :  { %v1337_v10 = vpop.f32.mrf.mxu1  ;;  %v1519_v26 = vsub.f32 %v5486_v25, %v1518_v36  ;;  %v1548_v14 = vand.u32 4294901760, %v5497_v13  ;;  %4028 = vmatmul.mubr.f32.vlgmr.msra.gmra.mxu0 %v1510_v4  ;;  %4070 = vmatmul.mubr.f32.gmra.mxu1 %v5483_v61  ;;  %v1396_v40 = vsel %vm1376_vm1, %v4461_v50, 0  ;;  %v1530_v19 = vand.u32 4294901760, %v1529_v42 }
 0x156   :  { %4474 = vtanh.f32 %v1344_v23  ;;  %v1338_v45 = vadd.f32 %v1337_v10, %v1165_v27  ;;  %4088 = vmatpush3.msra.mxu0 %v6388_v11  ;;  %v5518_v49 = vand.u32 4294901760, %v1396_v40  ;;  %v1538_v56 = vand.u32 4294901760, %v5512_v20  ;;  %4130 = vmatpush3.msra.mxu1 %v6387_v6 }
 0x157   :  { %v4463_v54 = vpop.eup %4462  ;;  %v1520_v37 = vand.u32 4294901760, %v1519_v26  ;;  %4089 = vmatprep.subr.mxu0 %v6389_v30  ;;  %v1549_v31 = vsub.f32 %v5497_v13, %v1548_v14  ;;  %v5528_v41 = vsub.f32 %v1399_v62, %v5509_v33  ;;  %4131 = vmatprep.subr.mxu1 %v6390_v32 }
 0x158   :  { %4476 = vtanh.f32 %v1338_v45  ;;  %v1405_v9 = vsel %vm1376_vm1, %v4463_v54, 0  ;;  %4072 = vmatprep.mubr.f32.mxu1 %v5518_v49  ;;  %v1539_v22 = vsub.f32 %v5512_v20, %v1538_v56  ;;  %v5538_v35 = vsub.f32 %v1396_v40, %v5518_v49  ;;  %4090 = vmatpush3.msra.mxu0 %v6389_v30  ;;  %v6393_v45 = vld [vmem:[#allocation12_spill] sm:$0xff] }
 0x159   :  { %v4465_v12 = vpop.eup %4464  ;;  %4030 = vmatprep.mubr.f32.mxu0 %v1520_v37  ;;  %v5535_v8 = vand.u32 4294901760, %v1405_v9  ;;  %4073 = vmatmul.mubr.f32.gmra.mxu1 %v5509_v33  ;;  %v1568_v57 = vand.u32 4294901760, %v5528_v41  ;;  %v1550_v27 = vand.u32 4294901760, %v1549_v31 }
 0x15a   :  { %4031 = vmatmul.mubr.f32.gmra.mxu0 %v1530_v19  ;;  %v1402_v38 = vsel %vm1376_vm1, %v4465_v12, 0  ;;  %v1540_v29 = vand.u32 4294901760, %v1539_v22  ;;  %v1558_v21 = vand.u32 4294901760, %v5538_v35  ;;  %4132 = vmatpush3.msra.mxu1 %v6390_v32 }
 0x15b   :  { %v4467_v18 = vpop.eup %4466  ;;  %v5543_v24 = vand.u32 4294901760, %v1402_v38  ;;  %v5548_v46 = vsub.f32 %v1405_v9, %v5535_v8  ;;  %4091 = vmatprep.subr.mxu0 %v6391_v2  ;;  %v1569_v55 = vsub.f32 %v5528_v41, %v1568_v57  ;;  %4133 = vmatprep.subr.mxu1 %v6392_v3 }
 0x15c   :  { %v1411_v60 = vsel %vm1376_vm1, %v4467_v18, 0  ;;  %4033 = vmatprep.mubr.f32.mxu0 %v1540_v29  ;;  %v1559_v4 = vsub.f32 %v5538_v35, %v1558_v21  ;;  %4092 = vmatpush3.msra.mxu0 %v6391_v2 }
 0x15d   :  { %v4469_v53 = vpop.eup %4468  ;;  %4075 = vmatprep.mubr.f32.mxu1 %v5543_v24  ;;  %v5561_v48 = vand.u32 4294901760, %v1411_v60  ;;  %v5564_v7 = vsub.f32 %v1402_v38, %v5543_v24  ;;  %v1588_v16 = vand.u32 4294901760, %v5548_v46  ;;  %4134 = vmatpush3.msra.mxu1 %v6392_v3  ;;  %v1570_v50 = vand.u32 4294901760, %v1569_v55  ;;  %v6394_v55 = vld [vmem:[#allocation20_spill] sm:$0xff] }
 0x15e   :  { %4034 = vmatmul.mubr.f32.gmra.mxu0 %v1550_v27  ;;  %4076 = vmatmul.mubr.f32.gmra.mxu1 %v5535_v8  ;;  %v1408_v5 = vsel %vm1376_vm1, %v4469_v53, 0  ;;  %v1560_v23 = vand.u32 4294901760, %v1559_v4 }
 0x15f   :  { %v4471_v15 = vpop.eup %4470  ;;  %v5569_v42 = vand.u32 4294901760, %v1408_v5  ;;  %v1578_v62 = vand.u32 4294901760, %v5564_v7  ;;  %v1589_v10 = vsub.f32 %v5548_v46, %v1588_v16  ;;  %4093 = vmatprep.subr.mxu0 %v6393_v45  ;;  %v5580_v40 = vsub.f32 %v1411_v60, %v5561_v48  ;;  %4195 = vmatprep.subr.mxu1 %v6384_v47 }
 0x160   :  { %v1417_v26 = vsel %vm1376_vm1, %v4471_v15, 0  ;;  %4036 = vmatprep.mubr.f32.mxu0 %v1560_v23  ;;  %4094 = vmatpush3.msra.mxu0 %v6393_v45 }
 0x161   :  { %v4473_v54 = vpop.eup %4472  ;;  %4078 = vmatprep.mubr.f32.mxu1 %v5569_v42  ;;  %v1579_v11 = vsub.f32 %v5564_v7, %v1578_v62  ;;  %v5587_v37 = vand.u32 4294901760, %v1417_v26  ;;  %v5590_v19 = vsub.f32 %v1408_v5, %v5569_v42  ;;  %v1608_v31 = vand.u32 4294901760, %v5580_v40  ;;  %4095 = vmatprep.subr.mxu0 %v6394_v55 }
 0x162   :  { %4037 = vmatmul.mubr.f32.gmra.mxu0 %v1570_v50  ;;  %4079 = vmatmul.mubr.f32.gmra.mxu1 %v5561_v48  ;;  %v1414_v30 = vsel %vm1376_vm1, %v4473_v54, 0  ;;  %v1590_v29 = vand.u32 4294901760, %v1589_v10 }
 0x163   :  { %v4475_v9 = vpop.eup %4474  ;;  %v1580_v12 = vand.u32 4294901760, %v1579_v11  ;;  %v5595_v22 = vand.u32 4294901760, %v1414_v30  ;;  %v1598_v38 = vand.u32 4294901760, %v5590_v19  ;;  %v5600_v18 = vsub.f32 %v1417_v26, %v5587_v37  ;;  %4096 = vmatpush3.msra.mxu0 %v6394_v55  ;;  %v6395_v11 = vld [vmem:[#allocation21_spill] sm:$0xff] }
 0x164   :  { %v1609_v27 = vsub.f32 %v5580_v40, %v1608_v31  ;;  %v1423_v2 = vsel %vm1376_vm1, %v4475_v9, 0  ;;  %4097 = vmatprep.subr.mxu0 %v6395_v11 }
 0x165   :  { %v4477_v60 = vpop.eup %4476  ;;  %4039 = vmatprep.mubr.f32.mxu0 %v1580_v12  ;;  %4081 = vmatprep.mubr.f32.mxu1 %v5595_v22  ;;  %v1599_v53 = vsub.f32 %v5590_v19, %v1598_v38  ;;  %v5611_v4 = vand.u32 4294901760, %v1423_v2  ;;  %v5614_v5 = vsub.f32 %v1414_v30, %v5595_v22  ;;  %v1628_v15 = vand.u32 4294901760, %v5600_v18 }
 0x166   :  { %4040 = vmatmul.mubr.f32.gmra.mxu0 %v1590_v29  ;;  %4082 = vmatmul.mubr.f32.gmra.mxu1 %v5587_v37  ;;  %v1420_v23 = vsel %vm1376_vm1, %v4477_v60, 0  ;;  %v1610_v45 = vand.u32 4294901760, %v1609_v27 }
 0x167   :  { %v1600_v50 = vand.u32 4294901760, %v1599_v53  ;;  %v5619_v10 = vand.u32 4294901760, %v1420_v23  ;;  %v1618_v26 = vand.u32 4294901760, %v5614_v5  ;;  %v1629_v54 = vsub.f32 %v5600_v18, %v1628_v15  ;;  %4098 = vmatpush3.msra.mxu0 %v6395_v11  ;;  %v6396_v53 = vld [vmem:[#allocation9_spill] sm:$0xff] }
 0x168   :  { %v5628_v30 = vsub.f32 %v1423_v2, %v5611_v4  ;;  %4159 = vmatprep.subr.mxu0 %v6396_v53 }
 0x169   :  { %4042 = vmatprep.mubr.f32.mxu0 %v1600_v50  ;;  %4084 = vmatprep.mubr.f32.mxu1 %v5619_v10  ;;  %v1619_v9 = vsub.f32 %v5614_v5, %v1618_v26  ;;  %v5635_v12 = vsub.f32 %v1420_v23, %v5619_v10  ;;  %v1630_v55 = vand.u32 4294901760, %v1629_v54 }
 0x16a   :  { %4043 = vmatmul.mubr.f32.gmra.mxu0 %v1610_v45  ;;  %4085 = vmatmul.mubr.f32.gmra.mxu1 %v5611_v4  ;;  %v1648_v29 = vand.u32 4294901760, %v5628_v30 }
 0x16b   :  { %4135 = vmatprep.mubr.f32.mxu1 %v1498_v59  ;;  %v1620_v27 = vand.u32 4294901760, %v1619_v9  ;;  %v1638_v2 = vand.u32 4294901760, %v5635_v12 }
 0x16c   :  { %v1649_v60 = vsub.f32 %v5628_v30, %v1648_v29 }
 0x16d   :  { %4045 = vmatprep.mubr.f32.mxu0 %v1620_v27  ;;  %v1639_v23 = vsub.f32 %v5635_v12, %v1638_v2 }
 0x16e   :  { %4046 = vmatmul.mubr.f32.gmra.mxu0 %v1630_v55  ;;  %4136 = vmatmul.mubr.f32.vlgmr.msra.gmra.mxu1 %v1508_v51  ;;  %v1650_v50 = vand.u32 4294901760, %v1649_v60  ;;  %v6399_v51 = vld [vmem:[#allocation18_spill] sm:$0xff] }
 0x16f   :  { %4138 = vmatprep.mubr.f32.mxu1 %v1518_v36  ;;  %v1640_v59 = vand.u32 4294901760, %v1639_v23  ;;  %4196 = vmatpush3.msra.mxu1 %v6384_v47  ;;  %v6400_v47 = vld [vmem:[#allocation22_spill] sm:$0xff] }
 0x170   :  { %4197 = vmatprep.subr.mxu1 %v6385_v0 }
 0x171   :  { %4048 = vmatprep.mubr.f32.mxu0 %v1640_v59  ;;  %4198 = vmatpush3.msra.mxu1 %v6385_v0 }
 0x172   :  { %4049 = vmatmul.mubr.f32.gmra.mxu0 %v1650_v50  ;;  %4139 = vmatmul.mubr.f32.gmra.mxu1 %v1528_v28 }
 0x173   :  { %4099 = vmatprep.mubr.f32.mxu0 %v5462_v39  ;;  %4141 = vmatprep.mubr.f32.mxu1 %v1538_v56  ;;  %v6397_v39 = vld [vmem:[#allocation13_spill] sm:$0xff] }
 0x174   :  { %4199 = vmatprep.subr.mxu1 %v6386_v1 }
 0x175   :  { %4200 = vmatpush3.msra.mxu1 %v6386_v1 }
 0x176   :  { %4100 = vmatmul.mubr.f32.vlgmr.msra.gmra.mxu0 %v5455_v44  ;;  %4142 = vmatmul.mubr.f32.gmra.mxu1 %v1548_v14  ;;  %v6398_v44 = vld [vmem:[#allocation16_spill] sm:$0xff] }
 0x177   :  { %4102 = vmatprep.mubr.f32.mxu0 %v5486_v25  ;;  %4144 = vmatprep.mubr.f32.mxu1 %v1558_v21 }
 0x178   :  { %4160 = vmatpush3.msra.mxu0 %v6396_v53  ;;  %4201 = vmatprep.subr.mxu1 %v6387_v6 }
 0x179   :  { %4161 = vmatprep.subr.mxu0 %v6397_v39  ;;  %4202 = vmatpush3.msra.mxu1 %v6387_v6 }
 0x17a   :  { %4103 = vmatmul.mubr.f32.gmra.mxu0 %v5475_v63  ;;  %4145 = vmatmul.mubr.f32.gmra.mxu1 %v1568_v57  ;;  %v6401_v63 = vld [vmem:[#allocation23_spill] sm:$0xff] }
 0x17b   :  { %4105 = vmatprep.mubr.f32.mxu0 %v5512_v20  ;;  %4147 = vmatprep.mubr.f32.mxu1 %v1578_v62 }
 0x17c   :  { %4162 = vmatpush3.msra.mxu0 %v6397_v39  ;;  %4203 = vmatprep.subr.mxu1 %v6390_v32 }
 0x17d   :  { %4163 = vmatprep.subr.mxu0 %v6398_v44  ;;  %4204 = vmatpush3.msra.mxu1 %v6390_v32 }
 0x17e   :  { %4106 = vmatmul.mubr.f32.gmra.mxu0 %v5497_v13  ;;  %4148 = vmatmul.mubr.f32.gmra.mxu1 %v1588_v16 }
 0x17f   :  { %4108 = vmatprep.mubr.f32.mxu0 %v5538_v35  ;;  %4150 = vmatprep.mubr.f32.mxu1 %v1598_v38 }
 0x180   :  { %4164 = vmatpush3.msra.mxu0 %v6398_v44  ;;  %4205 = vmatprep.subr.mxu1 %v6392_v3 }
 0x181   :  { %4165 = vmatprep.subr.mxu0 %v6399_v51  ;;  %4206 = vmatpush3.msra.mxu1 %v6392_v3 }
 0x182   :  { %4109 = vmatmul.mubr.f32.gmra.mxu0 %v5528_v41  ;;  %4151 = vmatmul.mubr.f32.gmra.mxu1 %v1608_v31 }
 0x183   :  { %4111 = vmatprep.mubr.f32.mxu0 %v5564_v7  ;;  %4153 = vmatprep.mubr.f32.mxu1 %v1618_v26 }
 0x184   :  { %4166 = vmatpush3.msra.mxu0 %v6399_v51 }
 0x185   :  { %4167 = vmatprep.subr.mxu0 %v6400_v47 }
 0x186   :  { %4112 = vmatmul.mubr.f32.gmra.mxu0 %v5548_v46  ;;  %4154 = vmatmul.mubr.f32.gmra.mxu1 %v1628_v15 }
 0x187   :  { %4114 = vmatprep.mubr.f32.mxu0 %v5590_v19  ;;  %4156 = vmatprep.mubr.f32.mxu1 %v1638_v2 }
 0x188   :  { %4168 = vmatpush3.msra.mxu0 %v6400_v47 }
 0x189   :  { %4169 = vmatprep.subr.mxu0 %v6401_v63 }
 0x18a   :  { %4115 = vmatmul.mubr.f32.gmra.mxu0 %v5580_v40  ;;  %4157 = vmatmul.mubr.f32.gmra.mxu1 %v1648_v29 }
 0x18b   :  { %4117 = vmatprep.mubr.f32.mxu0 %v5614_v5  ;;  %4207 = vmatprep.mubr.f32.mxu1 %v5452_v52 }
 0x18c   :  { %4170 = vmatpush3.msra.mxu0 %v6401_v63 }
 0x18e   :  { %4118 = vmatmul.mubr.f32.gmra.mxu0 %v5600_v18  ;;  %4208 = vmatmul.mubr.f32.vlgmr.msra.gmra.mxu1 %v5448_v58 }
 0x18f   :  { %4120 = vmatprep.mubr.f32.mxu0 %v5635_v12  ;;  %4210 = vmatprep.mubr.f32.mxu1 %v5467_v43 }
 0x192   :  { %4121 = vmatmul.mubr.f32.gmra.mxu0 %v5628_v30  ;;  %4211 = vmatmul.mubr.f32.gmra.mxu1 %v5459_v34 }
 0x193   :  { %4171 = vmatprep.mubr.f32.mxu0 %v5452_v52  ;;  %4213 = vmatprep.mubr.f32.mxu1 %v5493_v17 }
 0x196   :  { %4172 = vmatmul.mubr.f32.vlgmr.msra.gmra.mxu0 %v5448_v58  ;;  %4214 = vmatmul.mubr.f32.gmra.mxu1 %v5483_v61  ;;  %v4536_v58 = vmov 0.0  }
 0x197   :  { %4174 = vmatprep.mubr.f32.mxu0 %v5467_v43  ;;  %4216 = vmatprep.mubr.f32.mxu1 %v5518_v49 }
 0x198   :  { %4231 = vmatprep.subr.mxu0 %v4536_v58  ;;  %4266 = vmatprep.subr.mxu1 %v4536_v58 }
 0x19a   :  { %4175 = vmatmul.mubr.f32.gmra.mxu0 %v5459_v34  ;;  %4217 = vmatmul.mubr.f32.gmra.mxu1 %v5509_v33 }
 0x19b   :  { %4177 = vmatprep.mubr.f32.mxu0 %v5493_v17  ;;  %4219 = vmatprep.mubr.f32.mxu1 %v5543_v24 }
 0x19e   :  { %4178 = vmatmul.mubr.f32.gmra.mxu0 %v5483_v61  ;;  %4220 = vmatmul.mubr.f32.gmra.mxu1 %v5535_v8  ;;  %v5747_v61 = vld [vmem:[%s6237_s4] ss:$0 sm:$0xff] }
 0x19f   :  { %4180 = vmatprep.mubr.f32.mxu0 %v5518_v49  ;;  %4222 = vmatprep.mubr.f32.mxu1 %v5569_v42 }
 0x1a2   :  { %4181 = vmatmul.mubr.f32.gmra.mxu0 %v5509_v33  ;;  %4223 = vmatmul.mubr.f32.gmra.mxu1 %v5561_v48 }
 0x1a3   :  { %4183 = vmatprep.mubr.f32.mxu0 %v5543_v24  ;;  %4225 = vmatprep.mubr.f32.mxu1 %v5595_v22 }
 0x1a6   :  { %4184 = vmatmul.mubr.f32.gmra.mxu0 %v5535_v8  ;;  %4226 = vmatmul.mubr.f32.gmra.mxu1 %v5587_v37 }
 0x1a7   :  { %4186 = vmatprep.mubr.f32.mxu0 %v5569_v42  ;;  %4228 = vmatprep.mubr.f32.mxu1 %v5619_v10 }
 0x1aa   :  { %4187 = vmatmul.mubr.f32.gmra.mxu0 %v5561_v48  ;;  %4229 = vmatmul.mubr.f32.gmra.mxu1 %v5611_v4 }
 0x1ab   :  { %4189 = vmatprep.mubr.f32.mxu0 %v5595_v22  ;;  %4298 = vmatprep.mubr.msk.f32.mxu1 %vm4537_vm2, %v4536_v58 }
 0x1ae   :  { %4190 = vmatmul.mubr.f32.gmra.mxu0 %v5587_v37 }
 0x1af   :  { %4192 = vmatprep.mubr.f32.mxu0 %v5619_v10 }
 0x1b2   :  { %4193 = vmatmul.mubr.f32.gmra.mxu0 %v5611_v4 }
 0x1b3   :  { %4263 = vmatprep.mubr.msk.f32.mxu0 %vm4537_vm2, %v4536_v58 }
 0x20d   :  { %v4065_v52 = vpop.f32.mrf.mxu1 }
 0x20f   :  { %v1753_v34 = vpop.f32.mrf.mxu1 }
 0x211   :  { %v4068_v43 = vpop.f32.mrf.mxu1 }
 0x213   :  { %v1765_v0 = vpop.f32.mrf.mxu1 }
 0x215   :  { %v4029_v25 = vpop.f32.mrf.mxu0  ;;  %v4071_v28 = vpop.f32.mrf.mxu1 }
 0x216   :  { %v1513_v1 = vadd.f32 %v4029_v25, %v5747_v61 }
 0x217   :  { %v1502_v17 = vpop.f32.mrf.mxu0  ;;  %v1777_v36 = vpop.f32.mrf.mxu1 }
 0x218   :  { %v1503_v13 = vadd.f32 %v5747_v61, %v1502_v17  ;;  %v1760_v6 = vadd.f32 %v4065_v52, %v1513_v1 }
 0x219   :  { %v4074_v20 = vpop.f32.mrf.mxu1 }
 0x21a   :  { %v4032_v33 = vpop.f32.mrf.mxu0  ;;  %v1754_v49 = vadd.f32 %v1753_v34, %v1503_v13 }
 0x21b   :  { %v1533_v14 = vadd.f32 %v4032_v33, %v5747_v61  ;;  %v1789_v41 = vpop.f32.mrf.mxu1 }
 0x21c   :  { %v1522_v56 = vpop.f32.mrf.mxu0 }
 0x21d   :  { %v1523_v32 = vadd.f32 %v5747_v61, %v1522_v56  ;;  %v1772_v8 = vadd.f32 %v4068_v43, %v1533_v14 }
 0x21e   :  { %v4035_v35 = vpop.f32.mrf.mxu0  ;;  %v4077_v57 = vpop.f32.mrf.mxu1 }
 0x21f   :  { %v1553_v24 = vadd.f32 %v4035_v35, %v5747_v61  ;;  %v1766_v21 = vadd.f32 %v1765_v0, %v1523_v32 }
 0x220   :  { %v1542_v46 = vpop.f32.mrf.mxu0  ;;  %v1801_v3 = vpop.f32.mrf.mxu1 }
 0x221   :  { %v1543_v48 = vadd.f32 %v5747_v61, %v1542_v46  ;;  %v1784_v7 = vadd.f32 %v4071_v28, %v1553_v24 }
 0x222   :  { %v4038_v16 = vpop.f32.mrf.mxu0  ;;  %v4080_v42 = vpop.f32.mrf.mxu1 }
 0x223   :  { %v1573_v62 = vadd.f32 %v4038_v16, %v5747_v61  ;;  %v1778_v40 = vadd.f32 %v1777_v36, %v1543_v48 }
 0x224   :  { %v1562_v37 = vpop.f32.mrf.mxu0  ;;  %v1813_v19 = vpop.f32.mrf.mxu1 }
 0x225   :  { %v1563_v31 = vadd.f32 %v5747_v61, %v1562_v37  ;;  %v1796_v22 = vadd.f32 %v4074_v20, %v1573_v62 }
 0x226   :  { %v4041_v38 = vpop.f32.mrf.mxu0  ;;  %v4083_v18 = vpop.f32.mrf.mxu1 }
 0x227   :  { %v1593_v4 = vadd.f32 %v4041_v38, %v5747_v61  ;;  %v1790_v5 = vadd.f32 %v1789_v41, %v1563_v31 }
 0x228   :  { %v1582_v15 = vpop.f32.mrf.mxu0  ;;  %v1825_v10 = vpop.f32.mrf.mxu1 }
 0x229   :  { %v1583_v26 = vadd.f32 %v5747_v61, %v1582_v15  ;;  %v1808_v45 = vadd.f32 %v4077_v57, %v1593_v4 }
 0x22a   :  { %v4044_v54 = vpop.f32.mrf.mxu0  ;;  %v5759_v11 = vpop.f32.mrf.mxu1 }
 0x22b   :  { %v1613_v30 = vadd.f32 %v4044_v54, %v5747_v61  ;;  %v1802_v9 = vadd.f32 %v1801_v3, %v1583_v26 }
 0x22c   :  { %v1602_v12 = vpop.f32.mrf.mxu0  ;;  %v5762_v29 = vpop.f32.mrf.mxu1 }
 0x22d   :  { %v1603_v27 = vadd.f32 %v5747_v61, %v1602_v12  ;;  %v5765_v2 = vadd.f32 %v4080_v42, %v1613_v30 }
 0x22e   :  { %v4047_v55 = vpop.f32.mrf.mxu0  ;;  %v4137_v60 = vpop.f32.mrf.mxu1 }
 0x22f   :  { %v1633_v53 = vadd.f32 %v4047_v55, %v5747_v61  ;;  %v5768_v23 = vadd.f32 %v1813_v19, %v1603_v27 }
 0x230   :  { %v1622_v59 = vpop.f32.mrf.mxu0  ;;  %v2111_v50 = vpop.f32.mrf.mxu1 }
 0x231   :  { %v1623_v39 = vadd.f32 %v5747_v61, %v1622_v59  ;;  %v5771_v44 = vadd.f32 %v4083_v18, %v1633_v53 }
 0x232   :  { %v5773_v51 = vpop.f32.mrf.mxu0  ;;  %v4140_v47 = vpop.f32.mrf.mxu1 }
 0x233   :  { %v5775_v63 = vadd.f32 %v1825_v10, %v1623_v39 }
 0x234   :  { %v5777_v52 = vpop.f32.mrf.mxu0  ;;  %v2127_v34 = vpop.f32.mrf.mxu1 }
 0x236   :  { %v4101_v43 = vpop.f32.mrf.mxu0  ;;  %v4143_v0 = vpop.f32.mrf.mxu1 }
 0x237   :  { %v1935_v25 = vadd.f32 %v4101_v43, %v1760_v6 }
 0x238   :  { %v1927_v28 = vpop.f32.mrf.mxu0  ;;  %v2143_v1 = vpop.f32.mrf.mxu1 }
 0x239   :  { %v1928_v17 = vadd.f32 %v1927_v28, %v1754_v49  ;;  %v2120_v36 = vadd.f32 %v4137_v60, %v1935_v25 }
 0x23a   :  { %v4104_v13 = vpop.f32.mrf.mxu0  ;;  %v4146_v33 = vpop.f32.mrf.mxu1 }
 0x23b   :  { %v1949_v20 = vadd.f32 %v4104_v13, %v1772_v8  ;;  %v2112_v14 = vadd.f32 %v2111_v50, %v1928_v17 }
 0x23c   :  { %v1941_v56 = vpop.f32.mrf.mxu0  ;;  %v2159_v41 = vpop.f32.mrf.mxu1 }
 0x23d   :  { %v1942_v32 = vadd.f32 %v1941_v56, %v1766_v21  ;;  %v2136_v35 = vadd.f32 %v4140_v47, %v1949_v20 }
 0x23e   :  { %v4107_v57 = vpop.f32.mrf.mxu0  ;;  %v4149_v24 = vpop.f32.mrf.mxu1 }
 0x23f   :  { %v1963_v46 = vadd.f32 %v4107_v57, %v1784_v7  ;;  %v2128_v3 = vadd.f32 %v2127_v34, %v1942_v32 }
 0x240   :  { %v1955_v48 = vpop.f32.mrf.mxu0  ;;  %v2175_v16 = vpop.f32.mrf.mxu1 }
 0x241   :  { %v1956_v42 = vadd.f32 %v1955_v48, %v1778_v40  ;;  %v5779_v6 = vadd.f32 %v4143_v0, %v1963_v46 }
 0x242   :  { %v4110_v62 = vpop.f32.mrf.mxu0  ;;  %v5781_v49 = vpop.f32.mrf.mxu1 }
 0x243   :  { %v1977_v37 = vadd.f32 %v4110_v62, %v1796_v22  ;;  %v5783_v19 = vadd.f32 %v2143_v1, %v1956_v42 }
 0x244   :  { %v1969_v8 = vpop.f32.mrf.mxu0  ;;  %v5785_v31 = vpop.f32.mrf.mxu1 }
 0x245   :  { %v1970_v21 = vadd.f32 %v1969_v8, %v1790_v5  ;;  %v5787_v38 = vadd.f32 %v4146_v33, %v1977_v37  ;;  %v1653_v8 = vadd.f32 %v5773_v51, %v5747_v61 }
 0x246   :  { %v4113_v7 = vpop.f32.mrf.mxu0  ;;  %v4155_v40 = vpop.f32.mrf.mxu1 }
 0x247   :  { %v1991_v18 = vadd.f32 %v4113_v7, %v1808_v45  ;;  %v5793_v4 = vadd.f32 %v2159_v41, %v1970_v21 }
 0x248   :  { %v1983_v22 = vpop.f32.mrf.mxu0  ;;  %v2207_v15 = vpop.f32.mrf.mxu1 }
 0x249   :  { %v1984_v10 = vadd.f32 %v1983_v22, %v1802_v9  ;;  %v5795_v26 = vadd.f32 %v4149_v24, %v1991_v18 }
 0x24a   :  { %v4116_v5 = vpop.f32.mrf.mxu0  ;;  %v4158_v54 = vpop.f32.mrf.mxu1 }
 0x24b   :  { %v5797_v30 = vadd.f32 %v2175_v16, %v1984_v10  ;;  %v2005_v18 = vadd.f32 %v4116_v5, %v5765_v2 }
 0x24c   :  { %v1997_v12 = vpop.f32.mrf.mxu0  ;;  %v5799_v27 = vpop.f32.mrf.mxu1 }
 0x24d   :  { %v1998_v5 = vadd.f32 %v1997_v12, %v5768_v23 }
 0x24e   :  { %v4119_v55 = vpop.f32.mrf.mxu0  ;;  %v4209_v60 = vpop.f32.mrf.mxu1 }
 0x24f   :  { %v2019_v7 = vadd.f32 %v4119_v55, %v5771_v44 }
 0x250   :  { %v2011_v53 = vpop.f32.mrf.mxu0  ;;  %v2487_v59 = vpop.f32.mrf.mxu1 }
 0x252   :  { %v4122_v50 = vpop.f32.mrf.mxu0  ;;  %v4212_v45 = vpop.f32.mrf.mxu1 }
 0x254   :  { %v2025_v39 = vpop.f32.mrf.mxu0  ;;  %v2499_v47 = vpop.f32.mrf.mxu1 }
 0x256   :  { %v4173_v34 = vpop.f32.mrf.mxu0  ;;  %v5801_v43 = vpop.f32.mrf.mxu1 }
 0x257   :  { %v2327_v9 = vadd.f32 %v4173_v34, %v2120_v36 }
 0x258   :  { %v2320_v0 = vpop.f32.mrf.mxu0  ;;  %v5803_v25 = vpop.f32.mrf.mxu1 }
 0x259   :  { %v5805_v28 = vadd.f32 %v4209_v60, %v2327_v9  ;;  %v2321_v1 = vadd.f32 %v2320_v0, %v2112_v14  ;;  %v2012_v60 = vadd.f32 %v2011_v53, %v5775_v63  ;;  %v2216_v9 = vadd.f32 %v4155_v40, %v2019_v7 }
 0x25a   :  { %v4176_v17 = vpop.f32.mrf.mxu0  ;;  %v5807_v13 = vpop.f32.mrf.mxu1  ;;  %v2200_v0 = vadd.f32 %v5781_v49, %v2005_v18 }
 0x25b   :  { %v5809_v33 = vadd.f32 %v2487_v59, %v2321_v1  ;;  %v2339_v20 = vadd.f32 %v4176_v17, %v2136_v35  ;;  %v1844_v59 = vadd.f32 %v5759_v11, %v1653_v8  ;;  %v2208_v44 = vadd.f32 %v2207_v15, %v2012_v60 }
 0x25c   :  { %v2332_v56 = vpop.f32.mrf.mxu0  ;;  %v5811_v41 = vpop.f32.mrf.mxu1 }
 0x25d   :  { %v5813_v32 = vadd.f32 %v4212_v45, %v2339_v20  ;;  %v2333_v57 = vadd.f32 %v2332_v56, %v2128_v3  ;;  %v1643_v3 = vadd.f32 %v5747_v61, %v5777_v52 }
 0x25e   :  { %v5815_v24 = vpop.f32.mrf.mxu0  ;;  %v4221_v36 = vpop.f32.mrf.mxu1 }
 0x25f   :  { %v5817_v46 = vadd.f32 %v2499_v47, %v2333_v57  ;;  %v2033_v47 = vadd.f32 %v4122_v50, %v1844_v59  ;;  %v1838_v34 = vadd.f32 %v5762_v29, %v1643_v3 }
 0x260   :  { %v5819_v48 = vpop.f32.mrf.mxu0  ;;  %v2535_v14 = vpop.f32.mrf.mxu1 }
 0x261   :  { %v2026_v61 = vadd.f32 %v2025_v39, %v1838_v34  ;;  %v2232_v53 = vadd.f32 %v4158_v54, %v2033_v47  ;;  %v2192_v39 = vadd.f32 %v5785_v31, %v1998_v5  ;;  %v2345_v5 = vadd.f32 %v5819_v48, %v5783_v19 }
 0x262   :  { %v4182_v16 = vpop.f32.mrf.mxu0  ;;  %v4224_v42 = vpop.f32.mrf.mxu1 }
 0x263   :  { %v2224_v40 = vadd.f32 %v5799_v27, %v2026_v61 }
 0x264   :  { %v5821_v62 = vpop.f32.mrf.mxu0  ;;  %v2547_v37 = vpop.f32.mrf.mxu1 }
 0x266   :  { %v4185_v35 = vpop.f32.mrf.mxu0  ;;  %v4227_v22 = vpop.f32.mrf.mxu1 }
 0x267   :  { %v2375_v54 = vadd.f32 %v4185_v35, %v5795_v26 }
 0x268   :  { %v2368_v21 = vpop.f32.mrf.mxu0  ;;  %v2559_v51 = vpop.f32.mrf.mxu1 }
 0x269   :  { %v2542_v7 = vadd.f32 %v4221_v36, %v2375_v54  ;;  %v2369_v18 = vadd.f32 %v2368_v21, %v5797_v30  ;;  %v2351_v21 = vadd.f32 %v5815_v24, %v5779_v6 }
 0x26a   :  { %v4188_v10 = vpop.f32.mrf.mxu0  ;;  %v4230_v11 = vpop.f32.mrf.mxu1 }
 0x26b   :  { %v2387_v55 = vadd.f32 %v4188_v10, %v2200_v0 }
 0x26c   :  { %v2380_v45 = vpop.f32.mrf.mxu0  ;;  %v2571_v8 = vpop.f32.mrf.mxu1 }
 0x26d   :  { %v2554_v56 = vadd.f32 %v4224_v42, %v2387_v55  ;;  %v2381_v3 = vadd.f32 %v2380_v45, %v2192_v39  ;;  %v2363_v42 = vadd.f32 %v4182_v16, %v5787_v38  ;;  %v2357_v38 = vadd.f32 %v5821_v62, %v5793_v4 }
 0x26e   :  { %v4191_v1 = vpop.f32.mrf.mxu0 }
 0x26f   :  { %v2399_v52 = vadd.f32 %v4191_v1, %v2216_v9  ;;  %v2548_v12 = vadd.f32 %v2547_v37, %v2381_v3  ;;  %v2530_v45 = vadd.f32 %v5807_v13, %v2363_v42  ;;  %v2518_v1 = vadd.f32 %v5801_v43, %v2351_v21 }
 0x270   :  { %v2392_v2 = vpop.f32.mrf.mxu0 }
 0x271   :  { %v2566_v17 = vadd.f32 %v4227_v22, %v2399_v52  ;;  %v2393_v63 = vadd.f32 %v2392_v2, %v2208_v44  ;;  %v2536_v22 = vadd.f32 %v2535_v14, %v2369_v18 }
 0x272   :  { %v4194_v20 = vpop.f32.mrf.mxu0 }
 0x273   :  { %4478 = vtanh.f32 %v2566_v17  ;;  %v2560_v50 = vadd.f32 %v2559_v51, %v2393_v63  ;;  %v2411_v29 = vadd.f32 %v4194_v20, %v2232_v53  ;;  %v2524_v51 = vadd.f32 %v5811_v41, %v2357_v38  ;;  %v2598_v17 = vld [vmem:[#allocation2] sm:$0x1] }
 0x274   :  { %v2404_v49 = vpop.f32.mrf.mxu0 }
 0x275   :  { %v2578_v57 = vadd.f32 %v4230_v11, %v2411_v29  ;;  %v2405_v15 = vadd.f32 %v2404_v49, %v2224_v40  ;;  %4480 = vtanh.f32 %v2560_v50  ;;  %v4538_v50 = vmov 0  }
 0x276   :  { %4445 = vset.pattern.permute.xlu0 %v4538_v50  ;;  %v2512_v29 = vadd.f32 %v5803_v25, %v2345_v5 }
 0x277   :  { %4482 = vtanh.f32 %v2578_v57  ;;  %v2572_v23 = vadd.f32 %v2571_v8, %v2405_v15  ;;  %2601 = vperm.xlu0 %4445, %v2598_v17  }
 0x278   :  { %4484 = vtanh.f32 %v2554_v56 }
 0x279   :  { %4486 = vtanh.f32 %v2572_v23 }
 0x27a   :  { %4488 = vtanh.f32 %v2548_v12 }
 0x27b   :  { %4490 = vtanh.f32 %v2542_v7 }
 0x27c   :  { %4492 = vtanh.f32 %v2536_v22 }
 0x27d   :  { %4494 = vtanh.f32 %v2530_v45 }
 0x27e   :  { %4496 = vtanh.f32 %v2524_v51 }
 0x27f   :  { %4498 = vtanh.f32 %v2518_v1 }
 0x280   :  { %v4479_v27 = vpop.eup %4478  ;;  %4500 = vtanh.f32 %v2512_v29 }
 0x281   :  { %v2652_v10 = vsel %vm2608_vm3, %v4479_v27, 0  ;;  %4502 = vtanh.f32 %v5813_v32 }
 0x282   :  { %v4481_v31 = vpop.eup %4480  ;;  %v5844_v30 = vand.u32 4294901760, %v2652_v10  ;;  %4504 = vtanh.f32 %v5817_v46 }
 0x283   :  { %v2649_v14 = vsel %vm2608_vm3, %v4481_v31, 0  ;;  %4506 = vtanh.f32 %v5805_v28 }
 0x284   :  { %v4483_v60 = vpop.eup %4482  ;;  %v5864_v47 = vsub.f32 %v2652_v10, %v5844_v30  ;;  %v5867_v9 = vand.u32 4294901760, %v2649_v14  ;;  %4508 = vtanh.f32 %v5809_v33 }
 0x285   :  { %v4485_v59 = vpop.eup %4484  ;;  %v2658_v26 = vsel %vm2608_vm3, %v4483_v60, 0 }
 0x286   :  { %v4487_v37 = vpop.eup %4486  ;;  %v5842_v36 = vand.u32 4294901760, %v2658_v26  ;;  %v2646_v4 = vsel %vm2608_vm3, %v4485_v59, 0  ;;  %v5880_v55 = vsub.f32 %v2649_v14, %v5867_v9  ;;  %v2768_v2 = vand.u32 4294901760, %v5864_v47 }
 0x287   :  { %v2655_v16 = vsel %vm2608_vm3, %v4487_v37, 0  ;;  %v4489_v0 = vpop.eup %4488  ;;  %v5877_v61 = vand.u32 4294901760, %v2646_v4 }
 0x288   :  { %4232 = vmatpush3.xpose.msra.mxu0 %v5842_v36  ;;  %v5852_v35 = vsub.f32 %v2658_v26, %v5842_v36  ;;  %v5854_v13 = vand.u32 4294901760, %v2655_v16  ;;  %v4491_v52 = vpop.eup %4490  ;;  %v2643_v43 = vsel %vm2608_vm3, %v4489_v0, 0  ;;  %v2769_v19 = vsub.f32 %v5864_v47, %v2768_v2 }
 0x289   :  { %4233 = vmatprep.subr.mxu0 %v4536_v58  ;;  %v5893_v63 = vsub.f32 %v2646_v4, %v5877_v61  ;;  %v2640_v53 = vsel %vm2608_vm3, %v4491_v52, 0  ;;  %v5899_v48 = vand.u32 4294901760, %v2643_v43  ;;  %v2775_v20 = vand.u32 4294901760, %v5880_v55  ;;  %v4493_v40 = vpop.eup %4492 }
 0x28a   :  { %v5861_v62 = vsub.f32 %v2655_v16, %v5854_v13  ;;  %v2754_v34 = vand.u32 4294901760, %v5852_v35  ;;  %v5906_v56 = vand.u32 4294901760, %v2640_v53  ;;  %v4495_v49 = vpop.eup %4494  ;;  %v2770_v39 = vand.u32 4294901760, %v2769_v19 }
 0x28b   :  { %v5909_v57 = vsub.f32 %v2643_v43, %v5899_v48  ;;  %v2776_v25 = vsub.f32 %v5880_v55, %v2775_v20  ;;  %v2782_v15 = vand.u32 4294901760, %v5893_v63  ;;  %v2637_v8 = vsel %vm2608_vm3, %v4493_v40, 0  ;;  %v4497_v27 = vpop.eup %4496 }
 0x28c   :  { %4234 = vmatpush3.xpose.msra.mxu0 %v5854_v13  ;;  %v2755_v6 = vsub.f32 %v5852_v35, %v2754_v34  ;;  %v2761_v24 = vand.u32 4294901760, %v5861_v62  ;;  %v5921_v3 = vsub.f32 %v2640_v53, %v5906_v56  ;;  %v2634_v23 = vsel %vm2608_vm3, %v4495_v49, 0  ;;  %v4499_v42 = vpop.eup %4498 }
 0x28d   :  { %4235 = vmatprep.subr.mxu0 %v4536_v58  ;;  %v2777_v54 = vand.u32 4294901760, %v2776_v25  ;;  %v2783_v12 = vsub.f32 %v5893_v63, %v2782_v15  ;;  %v5927_v7 = vand.u32 4294901760, %v2637_v8  ;;  %v2789_v18 = vand.u32 4294901760, %v5909_v57  ;;  %v4501_v14 = vpop.eup %4500 }
 0x28e   :  { %v2756_v44 = vand.u32 4294901760, %v2755_v6  ;;  %v2762_v41 = vsub.f32 %v5861_v62, %v2761_v24  ;;  %v5933_v32 = vand.u32 4294901760, %v2634_v23  ;;  %v2796_v60 = vand.u32 4294901760, %v5921_v3  ;;  %v4503_v21 = vpop.eup %4502 }
 0x28f   :  { %v2784_v31 = vand.u32 4294901760, %v2783_v12  ;;  %v5936_v22 = vsub.f32 %v2637_v8, %v5927_v7  ;;  %v2790_v10 = vsub.f32 %v5909_v57, %v2789_v18  ;;  %v2631_v59 = vsel %vm2608_vm3, %v4497_v27, 0  ;;  %v4505_v17 = vpop.eup %4504 }
 0x290   :  { %4236 = vmatpush3.xpose.msra.mxu0 %v5844_v30  ;;  %4267 = vmatpush3.xpose.msra.mxu1 %v2756_v44  ;;  %v2763_v11 = vand.u32 4294901760, %v2762_v41  ;;  %v5949_v45 = vsub.f32 %v2634_v23, %v5933_v32  ;;  %v2628_v26 = vsel %vm2608_vm3, %v4499_v42, 0  ;;  %v2797_v46 = vsub.f32 %v5921_v3, %v2796_v60  ;;  %v4507_v19 = vpop.eup %4506 }
 0x291   :  { %4237 = vmatprep.subr.mxu0 %v4536_v58  ;;  %4268 = vmatprep.subr.mxu1 %v4536_v58  ;;  %v2791_v37 = vand.u32 4294901760, %v2790_v10  ;;  %v5955_v38 = vand.u32 4294901760, %v2631_v59  ;;  %v2803_v16 = vand.u32 4294901760, %v5936_v22  ;;  %v5961_v28 = vand.u32 4294901760, %v2628_v26  ;;  %v4509_v10 = vpop.eup %4508 }
 0x292   :  { %v2798_v4 = vand.u32 4294901760, %v2797_v46  ;;  %v2810_v6 = vand.u32 4294901760, %v5949_v45  ;;  %v2625_v1 = vsel %vm2608_vm3, %v4501_v14, 0  ;;  %v2622_v44 = vsel %vm2608_vm3, %v4503_v21, 0 }
 0x293   :  { %v5964_v51 = vsub.f32 %v2631_v59, %v5955_v38  ;;  %v2804_v0 = vsub.f32 %v5936_v22, %v2803_v16  ;;  %v5976_v52 = vsub.f32 %v2628_v26, %v5961_v28  ;;  %v5982_v33 = vand.u32 4294901760, %v2625_v1 }
 0x294   :  { %4238 = vmatpush3.xpose.msra.mxu0 %v5867_v9  ;;  %4269 = vmatpush3.xpose.msra.mxu1 %v2763_v11  ;;  %v2811_v5 = vsub.f32 %v5949_v45, %v2810_v6  ;;  %v5988_v53 = vand.u32 4294901760, %v2622_v44  ;;  %v2597_v11 = vld [vmem:[%s6238_s5] sm:$0x1]  ;;  %v2616_v23 = vsel %vm2608_vm3, %v4507_v19, 0  ;;  %v2613_v21 = vsel %vm2608_vm3, %v4509_v10, 0  ;;  %s4539_s5 = smov [#allocation3]  }
 0x295   :  { %4239 = vmatprep.subr.mxu0 %v4536_v58  ;;  %4270 = vmatprep.subr.mxu1 %v4536_v58  ;;  %v2805_v41 = vand.u32 4294901760, %v2804_v0  ;;  %v2817_v43 = vand.u32 4294901760, %v5964_v51  ;;  %v5994_v29 = vsub.f32 %v2625_v1, %v5982_v33  ;;  %v2824_v49 = vand.u32 4294901760, %v5976_v52  ;;  %s3314_s22 = sshll.u32 %s4539_s5, 4  ;;  %s3315_s22 = int_to_ptr.vmem [resolvable:$true] %s3314_s22 }
 0x296   :  { %v2812_v50 = vand.u32 4294901760, %v2811_v5  ;;  %v2610_v25 = vsel %vm2608_vm3, %v2597_v11, 0  ;;  %v6006_v8 = vsub.f32 %v2622_v44, %v5988_v53  ;;  %v6020_v59 = vand.u32 4294901760, %v2616_v23  ;;  %s4514_s23 = scalar_lea.vmem %s3315_s22, 16  ;;  %s4518_s24 = scalar_lea.vmem %s3315_s22, 32 }
 0x297   :  { %v2818_v40 = vsub.f32 %v5964_v51, %v2817_v43  ;;  %v2825_v12 = vsub.f32 %v5976_v52, %v2824_v49  ;;  %v2831_v42 = vand.u32 4294901760, %v5994_v29  ;;  %p4515_p0 = scmp.ne.s32.totalorder %s3315_s22, %s4514_s23  ;;  %p4519_p1 = scmp.lt.s32.totalorder %s3315_s22, %s3315_s22 }
 0x298   :  { %4240 = vmatpush3.xpose.msra.mxu0 %v5877_v61  ;;  %4271 = vmatpush3.xpose.msra.mxu1 %v2770_v39  ;;  %v2619_v39 = vsel %vm2608_vm3, %v4505_v17, 0  ;;  %v2838_v14 = vand.u32 4294901760, %v6006_v8  ;;  %v6037_v0 = vsub.f32 %v2616_v23, %v6020_v59  ;;  %p4520_p2 = scmp.lt.s32.totalorder %s4518_s24, %s4514_s23 }
 0x299   :  { %4241 = vmatprep.subr.mxu0 %v4536_v58  ;;  %4272 = vmatprep.subr.mxu1 %v4536_v58  ;;  %v6012_v27 = vand.u32 4294901760, %v2619_v39  ;;  %v2826_v26 = vand.u32 4294901760, %v2825_v12  ;;  %v2832_v46 = vsub.f32 %v5994_v29, %v2831_v42 }
 0x29a   :  { %v2839_v44 = vsub.f32 %v6006_v8, %v2838_v14  ;;  %p4521_p3 = por %p4520_p2, %p4519_p1 }
 0x29b   :  { %v2833_v1 = vand.u32 4294901760, %v2832_v46 }
 0x29c   :  { %4242 = vmatpush3.xpose.msra.mxu0 %v5899_v48  ;;  %4273 = vmatpush3.xpose.msra.mxu1 %v2777_v54  ;;  %v2819_v54 = vand.u32 4294901760, %v2818_v40  ;;  %v2840_v11 = vand.u32 4294901760, %v2839_v44  ;;  %v2852_v40 = vand.u32 4294901760, %v6037_v0  ;;  %p4522_p4 = pnand %p4521_p3, %p4515_p0 }
 0x29d   :  { %4243 = vmatprep.subr.mxu0 %v4536_v58  ;;  %4274 = vmatprep.subr.mxu1 %v4536_v58 }
 0x29e   :  { %v2853_v23 = vsub.f32 %v6037_v0, %v2852_v40 }
 0x2a0   :  { %4244 = vmatpush3.xpose.msra.mxu0 %v5906_v56  ;;  %4275 = vmatpush3.xpose.msra.mxu1 %v2784_v31  ;;  %v6015_v31 = vand.u32 4294901760, %v2610_v25  ;;  %v2854_v10 = vand.u32 4294901760, %v2853_v23 }
 0x2a1   :  { %4245 = vmatprep.subr.mxu0 %v4536_v58  ;;  %4276 = vmatprep.subr.mxu1 %v4536_v58 }
 0x2a4   :  { %4246 = vmatpush3.xpose.msra.mxu0 %v5927_v7  ;;  %4277 = vmatpush3.xpose.msra.mxu1 %v2791_v37  ;;  %v6023_v37 = vsub.f32 %v2619_v39, %v6012_v27 }
 0x2a5   :  { %4247 = vmatprep.subr.mxu0 %v4536_v58  ;;  %4278 = vmatprep.subr.mxu1 %v4536_v58 }
 0x2a6   :  { %v2845_v5 = vand.u32 4294901760, %v6023_v37 }
 0x2a8   :  { %4248 = vmatpush3.xpose.msra.mxu0 %v5933_v32  ;;  %4279 = vmatpush3.xpose.msra.mxu1 %v2798_v4  ;;  %v6031_v4 = vsub.f32 %v2610_v25, %v6015_v31 }
 0x2a9   :  { %4249 = vmatprep.subr.mxu0 %v4536_v58  ;;  %4280 = vmatprep.subr.mxu1 %v4536_v58 }
 0x2aa   :  { %v2743_v17 = vand.u32 4294901760, %v6031_v4 }
 0x2ac   :  { %4250 = vmatpush3.xpose.msra.mxu0 %v5955_v38  ;;  %4281 = vmatpush3.xpose.msra.mxu1 %v2805_v41  ;;  %v6042_v41 = vand.u32 4294901760, %v2613_v21  ;;  %v2744_v39 = vsub.f32 %v6031_v4, %v2743_v17 }
 0x2ad   :  { %4251 = vmatprep.subr.mxu0 %v4536_v58  ;;  %4282 = vmatprep.subr.mxu1 %v4536_v58 }
 0x2ae   :  { %v6050_v19 = vsub.f32 %v2613_v21, %v6042_v41  ;;  %v2745_v12 = vand.u32 4294901760, %v2744_v39 }
 0x2b0   :  { %4252 = vmatpush3.xpose.msra.mxu0 %v5961_v28  ;;  %4283 = vmatpush3.xpose.msra.mxu1 %v2812_v50  ;;  %v2846_v50 = vsub.f32 %v6023_v37, %v2845_v5 }
 0x2b1   :  { %4253 = vmatprep.subr.mxu0 %v4536_v58  ;;  %4284 = vmatprep.subr.mxu1 %v4536_v58 }
 0x2b2   :  { %v2847_v25 = vand.u32 4294901760, %v2846_v50 }
 0x2b4   :  { %4254 = vmatpush3.xpose.msra.mxu0 %v5982_v33  ;;  %4285 = vmatpush3.xpose.msra.mxu1 %v2819_v54  ;;  %v2859_v54 = vand.u32 4294901760, %v6050_v19 }
 0x2b5   :  { %4255 = vmatprep.subr.mxu0 %v4536_v58  ;;  %4286 = vmatprep.subr.mxu1 %v4536_v58 }
 0x2b8   :  { %4256 = vmatpush3.xpose.msra.mxu0 %v5988_v53  ;;  %4287 = vmatpush3.xpose.msra.mxu1 %v2826_v26  ;;  %v2860_v26 = vsub.f32 %v6050_v19, %v2859_v54 }
 0x2b9   :  { %4257 = vmatprep.subr.mxu0 %v4536_v58  ;;  %4288 = vmatprep.subr.mxu1 %v4536_v58 }
 0x2ba   :  { %v2861_v46 = vand.u32 4294901760, %v2860_v26 }
 0x2bc   :  { %4258 = vmatpush3.xpose.msra.mxu0 %v6012_v27  ;;  %4289 = vmatpush3.xpose.msra.mxu1 %v2833_v1 }
 0x2bd   :  { %4259 = vmatprep.subr.mxu0 %v4536_v58  ;;  %4290 = vmatprep.subr.mxu1 %v4536_v58 }
 0x2c0   :  { %4260 = vmatpush3.xpose.msra.mxu0 %v6020_v59  ;;  %4291 = vmatpush3.xpose.msra.mxu1 %v2840_v11 }
 0x2c1   :  { %4261 = vmatprep.subr.mxu0 %v4536_v58  ;;  %4292 = vmatprep.subr.mxu1 %v4536_v58 }
 0x2c4   :  { %4262 = vmatpush3.xpose.msra.mxu0 %v6042_v41  ;;  %4293 = vmatpush3.xpose.msra.mxu1 %v2847_v25 }
 0x2c5   :  { %4294 = vmatprep.subr.mxu1 %v4536_v58  ;;  %4301 = vmatprep.subr.mxu0 %v4536_v58 }
 0x2c7   :  { %4264 = vmatmul.mubr.f32.vlgmr.msra.gmra.mxu0 %v2745_v12 }
 0x2c8   :  { %4295 = vmatpush3.xpose.msra.mxu1 %v2854_v10  ;;  %4302 = vmatpush3.xpose.msra.mxu0 %v5852_v35 }
 0x2c9   :  { %4296 = vmatprep.subr.mxu1 %v4536_v58  ;;  %4303 = vmatprep.subr.mxu0 %v4536_v58 }
 0x2ca   :  { %4333 = vmatprep.mubr.msk.f32.mxu0 %vm4537_vm2, %v4536_v58 }
 0x2cc   :  { %4297 = vmatpush3.xpose.msra.mxu1 %v2861_v46  ;;  %4304 = vmatpush3.xpose.msra.mxu0 %v5861_v62 }
 0x2cd   :  { %4305 = vmatprep.subr.mxu0 %v4536_v58  ;;  %4336 = vmatprep.subr.mxu1 %v4536_v58 }
 0x2cf   :  { %4299 = vmatmul.mubr.f32.vlgmr.msra.gmra.mxu1 %v6015_v31 }
 0x2d0   :  { %4306 = vmatpush3.xpose.msra.mxu0 %v5864_v47  ;;  %4337 = vmatpush3.xpose.msra.mxu1 %v5842_v36 }
 0x2d1   :  { %4307 = vmatprep.subr.mxu0 %v4536_v58  ;;  %4338 = vmatprep.subr.mxu1 %v4536_v58 }
 0x2d2   :  { %4368 = vmatprep.mubr.msk.f32.mxu1 %vm4537_vm2, %v4536_v58 }
 0x2d4   :  { %4308 = vmatpush3.xpose.msra.mxu0 %v5880_v55  ;;  %4339 = vmatpush3.xpose.msra.mxu1 %v5854_v13 }
 0x2d5   :  { %4309 = vmatprep.subr.mxu0 %v4536_v58  ;;  %4340 = vmatprep.subr.mxu1 %v4536_v58 }
 0x2d8   :  { %4310 = vmatpush3.xpose.msra.mxu0 %v5893_v63  ;;  %4341 = vmatpush3.xpose.msra.mxu1 %v5844_v30 }
 0x2d9   :  { %4311 = vmatprep.subr.mxu0 %v4536_v58  ;;  %4342 = vmatprep.subr.mxu1 %v4536_v58 }
 0x2dc   :  { %4312 = vmatpush3.xpose.msra.mxu0 %v5909_v57  ;;  %4343 = vmatpush3.xpose.msra.mxu1 %v5867_v9 }
 0x2dd   :  { %4313 = vmatprep.subr.mxu0 %v4536_v58  ;;  %4344 = vmatprep.subr.mxu1 %v4536_v58 }
 0x2e0   :  { %4314 = vmatpush3.xpose.msra.mxu0 %v5921_v3  ;;  %4345 = vmatpush3.xpose.msra.mxu1 %v5877_v61 }
 0x2e1   :  { %4315 = vmatprep.subr.mxu0 %v4536_v58  ;;  %4346 = vmatprep.subr.mxu1 %v4536_v58 }
 0x2e4   :  { %4316 = vmatpush3.xpose.msra.mxu0 %v5936_v22  ;;  %4347 = vmatpush3.xpose.msra.mxu1 %v5899_v48 }
 0x2e5   :  { %4317 = vmatprep.subr.mxu0 %v4536_v58  ;;  %4348 = vmatprep.subr.mxu1 %v4536_v58 }
 0x2e8   :  { %4318 = vmatpush3.xpose.msra.mxu0 %v5949_v45  ;;  %4349 = vmatpush3.xpose.msra.mxu1 %v5906_v56 }
 0x2e9   :  { %4319 = vmatprep.subr.mxu0 %v4536_v58  ;;  %4350 = vmatprep.subr.mxu1 %v4536_v58 }
 0x2ec   :  { %4320 = vmatpush3.xpose.msra.mxu0 %v5964_v51  ;;  %4351 = vmatpush3.xpose.msra.mxu1 %v5927_v7 }
 0x2ed   :  { %4321 = vmatprep.subr.mxu0 %v4536_v58  ;;  %4352 = vmatprep.subr.mxu1 %v4536_v58 }
 0x2f0   :  { %4322 = vmatpush3.xpose.msra.mxu0 %v5976_v52  ;;  %4353 = vmatpush3.xpose.msra.mxu1 %v5933_v32 }
 0x2f1   :  { %4323 = vmatprep.subr.mxu0 %v4536_v58  ;;  %4354 = vmatprep.subr.mxu1 %v4536_v58 }
 0x2f4   :  { %4324 = vmatpush3.xpose.msra.mxu0 %v5994_v29  ;;  %4355 = vmatpush3.xpose.msra.mxu1 %v5955_v38 }
 0x2f5   :  { %4325 = vmatprep.subr.mxu0 %v4536_v58  ;;  %4356 = vmatprep.subr.mxu1 %v4536_v58 }
 0x2f8   :  { %4326 = vmatpush3.xpose.msra.mxu0 %v6006_v8  ;;  %4357 = vmatpush3.xpose.msra.mxu1 %v5961_v28 }
 0x2f9   :  { %4327 = vmatprep.subr.mxu0 %v4536_v58  ;;  %4358 = vmatprep.subr.mxu1 %v4536_v58 }
 0x2fc   :  { %4328 = vmatpush3.xpose.msra.mxu0 %v6023_v37  ;;  %4359 = vmatpush3.xpose.msra.mxu1 %v5982_v33 }
 0x2fd   :  { %4329 = vmatprep.subr.mxu0 %v4536_v58  ;;  %4360 = vmatprep.subr.mxu1 %v4536_v58 }
 0x300   :  { %4330 = vmatpush3.xpose.msra.mxu0 %v6037_v0  ;;  %4361 = vmatpush3.xpose.msra.mxu1 %v5988_v53 }
 0x301   :  { %4331 = vmatprep.subr.mxu0 %v4536_v58  ;;  %4362 = vmatprep.subr.mxu1 %v4536_v58 }
 0x304   :  { %4332 = vmatpush3.xpose.msra.mxu0 %v6050_v19  ;;  %4363 = vmatpush3.xpose.msra.mxu1 %v6012_v27 }
 0x305   :  { %4364 = vmatprep.subr.mxu1 %v4536_v58  ;;  %4371 = vmatprep.subr.mxu0 %v4536_v58 }
 0x307   :  { %4334 = vmatmul.mubr.f32.vlgmr.msra.gmra.mxu0 %v6031_v4 }
 0x308   :  { %4365 = vmatpush3.xpose.msra.mxu1 %v6020_v59  ;;  %4372 = vmatpush3.xpose.msra.mxu0 %v2754_v34 }
 0x309   :  { %4366 = vmatprep.subr.mxu1 %v4536_v58  ;;  %4373 = vmatprep.subr.mxu0 %v4536_v58 }
 0x30a   :  { %4403 = vmatprep.mubr.msk.f32.mxu0 %vm4537_vm2, %v4536_v58 }
 0x30c   :  { %4367 = vmatpush3.xpose.msra.mxu1 %v6042_v41  ;;  %4374 = vmatpush3.xpose.msra.mxu0 %v2761_v24 }
 0x30d   :  { %4375 = vmatprep.subr.mxu0 %v4536_v58  ;;  %4406 = vmatprep.subr.mxu1 %v4536_v58 }
 0x30f   :  { %4369 = vmatmul.mubr.f32.vlgmr.msra.gmra.mxu1 %v2743_v17 }
 0x310   :  { %4376 = vmatpush3.xpose.msra.mxu0 %v2768_v2  ;;  %4407 = vmatpush3.xpose.msra.mxu1 %v5842_v36  ;;  %v2604_v36 = vlaneseq }
 0x311   :  { %4377 = vmatprep.subr.mxu0 %v4536_v58  ;;  %4408 = vmatprep.subr.mxu1 %v4536_v58 }
 0x312   :  { %4438 = vmatprep.mubr.msk.f32.mxu1 %vm4537_vm2, %v4536_v58 }
 0x314   :  { %4378 = vmatpush3.xpose.msra.mxu0 %v2775_v20  ;;  %4409 = vmatpush3.xpose.msra.mxu1 %v5854_v13  ;;  %v2602_v13 = vpop.permute.xlu0 %2601 }
 0x315   :  { %4379 = vmatprep.subr.mxu0 %v4536_v58  ;;  %4410 = vmatprep.subr.mxu1 %v4536_v58 }
 0x318   :  { %4380 = vmatpush3.xpose.msra.mxu0 %v2782_v15  ;;  %4411 = vmatpush3.xpose.msra.mxu1 %v5844_v30  ;;  %v2605_v30 = vshrl.u32 %v2604_v36, 7 }
 0x319   :  { %4381 = vmatprep.subr.mxu0 %v4536_v58  ;;  %4412 = vmatprep.subr.mxu1 %v4536_v58 }
 0x31a   :  { %v2606_v35 = vsub.s32 0, %v2605_v30 }
 0x31c   :  { %4382 = vmatpush3.xpose.msra.mxu0 %v2789_v18  ;;  %4413 = vmatpush3.xpose.msra.mxu1 %v5867_v9  ;;  %v2607_v47 = vrot.slane %v2602_v13, %v2606_v35 }
 0x31d   :  { %4383 = vmatprep.subr.mxu0 %v4536_v58  ;;  %4414 = vmatprep.subr.mxu1 %v4536_v58 }
 0x320   :  { %4384 = vmatpush3.xpose.msra.mxu0 %v2796_v60  ;;  %4415 = vmatpush3.xpose.msra.mxu1 %v5877_v61 }
 0x321   :  { %4385 = vmatprep.subr.mxu0 %v4536_v58  ;;  %4416 = vmatprep.subr.mxu1 %v4536_v58 }
 0x324   :  { %4386 = vmatpush3.xpose.msra.mxu0 %v2803_v16  ;;  %4417 = vmatpush3.xpose.msra.mxu1 %v5899_v48 }
 0x325   :  { %4387 = vmatprep.subr.mxu0 %v4536_v58  ;;  %4418 = vmatprep.subr.mxu1 %v4536_v58 }
 0x328   :  { %4388 = vmatpush3.xpose.msra.mxu0 %v2810_v6  ;;  %4419 = vmatpush3.xpose.msra.mxu1 %v5906_v56 }
 0x329   :  { %4389 = vmatprep.subr.mxu0 %v4536_v58  ;;  %4420 = vmatprep.subr.mxu1 %v4536_v58 }
 0x32c   :  { %4390 = vmatpush3.xpose.msra.mxu0 %v2817_v43  ;;  %4421 = vmatpush3.xpose.msra.mxu1 %v5927_v7 }
 0x32d   :  { %4391 = vmatprep.subr.mxu0 %v4536_v58  ;;  %4422 = vmatprep.subr.mxu1 %v4536_v58 }
 0x330   :  { %4392 = vmatpush3.xpose.msra.mxu0 %v2824_v49  ;;  %4423 = vmatpush3.xpose.msra.mxu1 %v5933_v32 }
 0x331   :  { %4393 = vmatprep.subr.mxu0 %v4536_v58  ;;  %4424 = vmatprep.subr.mxu1 %v4536_v58 }
 0x334   :  { %4394 = vmatpush3.xpose.msra.mxu0 %v2831_v42  ;;  %4425 = vmatpush3.xpose.msra.mxu1 %v5955_v38 }
 0x335   :  { %4395 = vmatprep.subr.mxu0 %v4536_v58  ;;  %4426 = vmatprep.subr.mxu1 %v4536_v58 }
 0x338   :  { %4396 = vmatpush3.xpose.msra.mxu0 %v2838_v14  ;;  %4427 = vmatpush3.xpose.msra.mxu1 %v5961_v28 }
 0x339   :  { %4397 = vmatprep.subr.mxu0 %v4536_v58  ;;  %4428 = vmatprep.subr.mxu1 %v4536_v58 }
 0x33c   :  { %4398 = vmatpush3.xpose.msra.mxu0 %v2845_v5  ;;  %4429 = vmatpush3.xpose.msra.mxu1 %v5982_v33 }
 0x33d   :  { %4399 = vmatprep.subr.mxu0 %v4536_v58  ;;  %4430 = vmatprep.subr.mxu1 %v4536_v58 }
 0x340   :  { %4400 = vmatpush3.xpose.msra.mxu0 %v2852_v40  ;;  %4431 = vmatpush3.xpose.msra.mxu1 %v5988_v53 }
 0x341   :  { %4401 = vmatprep.subr.mxu0 %v4536_v58  ;;  %4432 = vmatprep.subr.mxu1 %v4536_v58 }
 0x344   :  { %4402 = vmatpush3.xpose.msra.mxu0 %v2859_v54  ;;  %4433 = vmatpush3.xpose.msra.mxu1 %v6012_v27 }
 0x345   :  { %4434 = vmatprep.subr.mxu1 %v4536_v58 }
 0x347   :  { %4404 = vmatmul.mubr.f32.vlgmr.msra.gmra.mxu0 %v6015_v31 }
 0x348   :  { %4435 = vmatpush3.xpose.msra.mxu1 %v6020_v59 }
 0x349   :  { %4436 = vmatprep.subr.mxu1 %v4536_v58 }
 0x34c   :  { %4437 = vmatpush3.xpose.msra.mxu1 %v6042_v41 }
 0x34f   :  { %4439 = vmatmul.mubr.f32.vlgmr.msra.gmra.mxu1 %v6015_v31 }
 0x387   :  { %v2747_v62 = vpop.f32.mrf.mxu0 }
 0x388   :  { %v2748_v9 = vadd.f32 %v2747_v62, %v2607_v47 }
 0x389   :  { %v4265_v34 = vpop.f32.mrf.mxu0 }
 0x38f   :  { %v2898_v24 = vpop.f32.mrf.mxu1 }
 0x390   :  { %v2899_v61 = vadd.f32 %v2898_v24, %v2748_v9 }
 0x391   :  { %v4300_v55 = vpop.f32.mrf.mxu1 }
 0x3c7   :  { %v3002_v2 = vpop.f32.mrf.mxu0 }
 0x3c8   :  { %v3003_v63 = vadd.f32 %v3002_v2, %v2899_v61 }
 0x3c9   :  { %v4335_v48 = vpop.f32.mrf.mxu0 }
 0x3cf   :  { %v3091_v20 = vpop.f32.mrf.mxu1 }
 0x3d0   :  { %v3092_v15 = vadd.f32 %v3091_v20, %v3003_v63 }
 0x3d1   :  { %v4370_v58 = vpop.f32.mrf.mxu1 }
 0x407   :  { %v3210_v56 = vpop.f32.mrf.mxu0 }
 0x408   :  { %v3211_v3 = vadd.f32 %v3210_v56, %v3092_v15 }
 0x409   :  { %v4405_v57 = vpop.f32.mrf.mxu0 }
 0x40f   :  { %v3297_v7 = vpop.f32.mrf.mxu1 }
 0x410   :  { %v3298_v18 = vadd.f32 %v3297_v7, %v3211_v3 }
 0x411   :  { %v4440_v32 = vpop.f32.mrf.mxu1 }
 0x412   :  { %v3324_v22 = vmul.f32 -1.442695, %v3298_v18 }
 0x414   :  { %4510 = vpow2.f32 %v3324_v22 }
 0x421   :  { %v4511_v60 = vpop.eup %4510 }
 0x422   :  { %v3304_v45 = vadd.f32 1.0, %v4511_v60 }
 0x424   :  { %4512 = vrcp.f32 %v3304_v45 }
 0x431   :  { %v4513_v38 = vpop.eup %4512 }
 0x432   :  { %3307 = vst [vmem:[#allocation3] sm:$0x1] %v4513_v38 }
 0x433   :  { %4525 = shalt.err (!%p4522_p4)
}
 0x434   :  { %3317 = dma.vmem_to_hbm [thread:$0]  %s3315_s22, 16, %s6240_s7, [#allocation4]  }
 0x435   :  { %4534 = dma.done.wait [#allocation4], 16  }
 0x436   :  { %4535 = vsyncadd [#allocation4], 4294967280 }
 0x437   :  { %3321 = vsyncpa [#allocation4], 1 }

</bundles_post_ra>
